<compile_context>
chip_gen: v7x
topology: tpu7x:2x2x1
jax: 0.10.0
libtpu: 0.0.40
codegen_flags: <defaults>
</compile_context>

<pallas_src>
import functools

import jax
import jax.numpy as jnp
from jax.experimental import pallas as pl
from jax.experimental.pallas import tpu as pltpu

_VMEM = pl.BlockSpec(memory_space=pltpu.MemorySpace.VMEM)
_SMEM = pl.BlockSpec(memory_space=pltpu.MemorySpace.SMEM)

_LN_EPS = 1e-5


# --------------------------------------------------------------------------------------
# small helpers
# --------------------------------------------------------------------------------------
def _pick_row_tile(n):
    for c in (512, 256, 128, 64, 32, 16, 8):
        if c <= n and n % c == 0:
            return c
    return n


def _pick_k_tile(n):
    # K tiles are the lane dim of the adjacency block: must be a 128-multiple, else full K.
    for c in (1024, 512, 256, 128):
        if c <= n and n % c == 0:
            return c
    return n


def _matmul_nt(a, b):
    """a @ b.T on the MXU without an explicit transpose."""
    return jax.lax.dot_general(
        a, b, (((1,), (1,)), ((), ())), preferred_element_type=jnp.float32
    )


def _gelu(x):
    # TODO(synk): PyTorch nn.GELU defaults to the exact erf form; tanh approx (~1e-3 dev).
    c = 0.7978845608028654  # sqrt(2/pi)
    return 0.5 * x * (1.0 + jnp.tanh(c * (x + 0.044715 * x * x * x)))


def _projection_head(x, w1, b1, w2, b2, gamma, beta, ln_group):
    """ProjectionHead: Linear -> GELU -> Linear -> (dropout = identity) -> +residual -> LayerNorm.

    LayerNorm is applied independently on contiguous `ln_group`-wide column groups so the
    same code serves the single-branch text head and the two-branch (block-diagonal) node head.
    TODO(synk): dropout is inference-mode identity (no PRNG dropout implemented).
    """
    proj = jnp.dot(x, w1, preferred_element_type=jnp.float32) + b1
    h = _gelu(proj)
    h = jnp.dot(h, w2, preferred_element_type=jnp.float32) + b2
    h = h + proj
    d = h.shape[-1]
    parts = []
    for lo in range(0, d, ln_group):
        hh = h[:, lo:lo + ln_group]
        mu = jnp.mean(hh, axis=-1, keepdims=True)
        var = jnp.mean((hh - mu) ** 2, axis=-1, keepdims=True)
        parts.append((hh - mu) * jax.lax.rsqrt(var + _LN_EPS))
    hn = parts[0] if len(parts) == 1 else jnp.concatenate(parts, axis=-1)
    return hn * gamma + beta


# --------------------------------------------------------------------------------------
# Pallas kernels
# --------------------------------------------------------------------------------------
def _featproj_kernel(x_ref, wfp_ref, bfp_ref, w1_ref, o_ref):
    # Z1 = (X @ [Wfp | Wfp_prune] + b) @ blockdiag(Wgcn1, Wgcn1_prune)     (row-tiled)
    f = jnp.dot(x_ref[...], wfp_ref[...], preferred_element_type=jnp.float32) + bfp_ref[...]
    o_ref[...] = jnp.dot(f, w1_ref[...], preferred_element_type=jnp.float32)


def _gcn1_kernel(adj_ref, z1_ref, w2_ref, o_ref, acc_ref):
    # GCN layer 1 (both branches): H1 = relu(adj @ Z1); output Z2 = H1 @ blockdiag(W2, W2_prune)
    k = pl.program_id(1)

    @pl.when(k == 0)
    def _():
        acc_ref[...] = jnp.zeros_like(acc_ref)

    acc_ref[...] += jnp.dot(adj_ref[...], z1_ref[...], preferred_element_type=jnp.float32)

    @pl.when(k == pl.num_programs(1) - 1)
    def _():
        h1 = jnp.maximum(acc_ref[...], 0.0)
        o_ref[...] = jnp.dot(h1, w2_ref[...], preferred_element_type=jnp.float32)


def _gcn2_heads_kernel(adj_ref, z2_ref, w1_ref, b1_ref, w2_ref, b2_ref, g_ref, bt_ref,
                       o_ref, acc_ref, *, proj_dim):
    # GCN layer 2 (both branches) + both node projection heads; lane-dense 128-wide output:
    #   [node_embed | node_embed_prune | node_proj | node_proj_prune]
    k = pl.program_id(1)

    @pl.when(k == 0)
    def _():
        acc_ref[...] = jnp.zeros_like(acc_ref)

    acc_ref[...] += jnp.dot(adj_ref[...], z2_ref[...], preferred_element_type=jnp.float32)

    @pl.when(k == pl.num_programs(1) - 1)
    def _():
        h2 = acc_ref[...]  # (tm, 2E): [node_embed | node_embed_prune]
        heads = _projection_head(h2, w1_ref[...], b1_ref[...], w2_ref[...], b2_ref[...],
                                 g_ref[...], bt_ref[...], ln_group=proj_dim)
        o_ref[...] = jnp.concatenate([h2, heads], axis=-1)


def _softmax_rows(x):
    m = jnp.max(x, axis=-1, keepdims=True)
    e = jnp.exp(x - m)
    return e * pl.reciprocal(jnp.sum(e, axis=-1, keepdims=True), approx=True)


def _xent_row_col_sums(logits, targets):
    """Returns (sum_i xent(logits, targets)[i], sum_j xent(logits.T, targets.T)[j]) with
    no materialized transpose: the transposed cross-entropy uses a column-wise LSE."""
    m_r = jnp.max(logits, axis=-1, keepdims=True)
    lse_r = m_r + jnp.log(jnp.sum(jnp.exp(logits - m_r), axis=-1, keepdims=True))
    m_c = jnp.max(logits, axis=0, keepdims=True)
    lse_c = m_c + jnp.log(jnp.sum(jnp.exp(logits - m_c), axis=0, keepdims=True))
    tl = jnp.sum(targets * logits)
    row = jnp.sum(lse_r * jnp.sum(targets, axis=-1, keepdims=True)) - tl
    col = jnp.sum(lse_c * jnp.sum(targets, axis=0, keepdims=True)) - tl
    return row, col


def _text_loss_kernel(tf_ref, w1_ref, b1_ref, w2_ref, b2_ref, g_ref, bt_ref, pb_ref,
                      loss_ref, *, temperature, proj_dim):
    """Text projection head + fused contrastive loss (args.pos == False branch)."""
    T = temperature
    P = proj_dim
    txt = _projection_head(tf_ref[...], w1_ref[...], b1_ref[...], w2_ref[...], b2_ref[...],
                           g_ref[...], bt_ref[...], ln_group=P)      # text_embeddings (B, P)
    nb = pb_ref[:, :P]    # node_embedding_batch        (full graph)   (B, P)
    npr = pb_ref[:, P:]   # node_embedding_batch_prune  (pruned graph) (B, P)
    B = nb.shape[0]
    inv_T = 1.0 / T

    # ---- inter (node <-> text) ----
    logits_prune = _matmul_nt(npr, txt) * inv_T
    text_similarity = _matmul_nt(txt, txt)
    nodes_similarity_prune = _matmul_nt(npr, npr)
    targets = _softmax_rows((text_similarity + nodes_similarity_prune) * (0.5 * T))
    nodes_loss_sum, text_loss_sum = _xent_row_col_sums(logits_prune, targets)

    # ---- intra (full graph <-> pruned graph) ----
    logits_intra = _matmul_nt(nb, npr) * inv_T
    nodes_similarity = _matmul_nt(nb, nb)
    targets_intra = _softmax_rows((nodes_similarity_prune + nodes_similarity) * (0.5 * T))
    intra_row_sum, intra_col_sum = _xent_row_col_sums(logits_intra, targets_intra)

    # loss = mean(loss_inter) + mean(loss_intra), each = 0.5*(row+col)/B
    loss_ref[0, 0] = 0.5 * (nodes_loss_sum + text_loss_sum + intra_row_sum + intra_col_sum) * (1.0 / B)


# --------------------------------------------------------------------------------------
# pallas_call wrappers
# --------------------------------------------------------------------------------------
def fused_featproj(x, wfp_cat, bfp_cat, w1_blk, *, row_tile):
    N, F = x.shape
    H2 = w1_blk.shape[1]
    tm = row_tile
    return pl.pallas_call(
        _featproj_kernel,
        out_shape=jax.ShapeDtypeStruct((N, H2), jnp.float32),
        grid=(N // tm,),
        in_specs=[
            pl.BlockSpec((tm, F), lambda i: (i, 0)),
            pl.BlockSpec((F, H2), lambda i: (0, 0)),
            pl.BlockSpec((1, H2), lambda i: (0, 0)),
            pl.BlockSpec((H2, H2), lambda i: (0, 0)),
        ],
        out_specs=pl.BlockSpec((tm, H2), lambda i: (i, 0)),
        compiler_params=pltpu.CompilerParams(dimension_semantics=("parallel",)),
    )(x, wfp_cat, bfp_cat, w1_blk)


def fused_gcn1(adj, z1, w2_blk, *, row_tile, k_tile):
    N = adj.shape[0]
    H2 = z1.shape[1]
    E2 = w2_blk.shape[1]
    tm, tk = row_tile, k_tile
    return pl.pallas_call(
        _gcn1_kernel,
        out_shape=jax.ShapeDtypeStruct((N, E2), jnp.float32),
        grid=(N // tm, N // tk),
        in_specs=[
            pl.BlockSpec((tm, tk), lambda i, k: (i, k)),
            pl.BlockSpec((tk, H2), lambda i, k: (k, 0)),
            pl.BlockSpec((H2, E2), lambda i, k: (0, 0)),
        ],
        out_specs=pl.BlockSpec((tm, E2), lambda i, k: (i, 0)),
        scratch_shapes=[pltpu.VMEM((tm, H2), jnp.float32)],
        compiler_params=pltpu.CompilerParams(dimension_semantics=("parallel", "arbitrary")),
    )(adj, z1, w2_blk)


def fused_gcn2_heads(adj, z2, head, *, proj_dim, row_tile, k_tile):
    N = adj.shape[0]
    E2 = z2.shape[1]
    P2 = head["w1"].shape[1]
    tm, tk = row_tile, k_tile
    return pl.pallas_call(
        functools.partial(_gcn2_heads_kernel, proj_dim=proj_dim),
        out_shape=jax.ShapeDtypeStruct((N, E2 + P2), jnp.float32),
        grid=(N // tm, N // tk),
        in_specs=[
            pl.BlockSpec((tm, tk), lambda i, k: (i, k)),
            pl.BlockSpec((tk, E2), lambda i, k: (k, 0)),
            pl.BlockSpec((E2, P2), lambda i, k: (0, 0)),
            pl.BlockSpec((1, P2), lambda i, k: (0, 0)),
            pl.BlockSpec((P2, P2), lambda i, k: (0, 0)),
            pl.BlockSpec((1, P2), lambda i, k: (0, 0)),
            pl.BlockSpec((1, P2), lambda i, k: (0, 0)),
            pl.BlockSpec((1, P2), lambda i, k: (0, 0)),
        ],
        out_specs=pl.BlockSpec((tm, E2 + P2), lambda i, k: (i, 0)),
        scratch_shapes=[pltpu.VMEM((tm, E2), jnp.float32)],
        compiler_params=pltpu.CompilerParams(dimension_semantics=("parallel", "arbitrary")),
    )(adj, z2, head["w1"], head["b1"], head["w2"], head["b2"], head["gamma"], head["beta"])


def text_and_cl_loss(text_features, text_head, proj_batch, *, temperature, proj_dim):
    loss = pl.pallas_call(
        functools.partial(_text_loss_kernel, temperature=float(temperature), proj_dim=proj_dim),
        out_shape=jax.ShapeDtypeStruct((1, 1), jnp.float32),
        in_specs=[_VMEM] * 8,
        out_specs=_SMEM,
    )(text_features, text_head["w1"], text_head["b1"], text_head["w2"], text_head["b2"],
      text_head["gamma"], text_head["beta"], proj_batch)
    return loss[0, 0]


# --------------------------------------------------------------------------------------
# parameter construction + model (glue in plain JAX, compute in Pallas)
# --------------------------------------------------------------------------------------
def init_projection_head(key, embedding_dim, projection_dim):
    k1, k2 = jax.random.split(key)
    return dict(
        w1=jax.random.normal(k1, (embedding_dim, projection_dim), jnp.float32)
        / jnp.sqrt(float(embedding_dim)),
        b1=jnp.zeros((1, projection_dim), jnp.float32),
        w2=jax.random.normal(k2, (projection_dim, projection_dim), jnp.float32)
        / jnp.sqrt(float(projection_dim)),
        b2=jnp.zeros((1, projection_dim), jnp.float32),
        gamma=jnp.ones((1, projection_dim), jnp.float32),
        beta=jnp.zeros((1, projection_dim), jnp.float32),
    )


def _block_diag(a, b):
    ra, ca = a.shape
    rb, cb = b.shape
    top = jnp.concatenate([a, jnp.zeros((ra, cb), a.dtype)], axis=1)
    bot = jnp.concatenate([jnp.zeros((rb, ca), b.dtype), b], axis=1)
    return jnp.concatenate([top, bot], axis=0)


def _cat_heads(full, prune):
    return dict(
        w1=_block_diag(full["w1"], prune["w1"]),
        b1=jnp.concatenate([full["b1"], prune["b1"]], axis=1),
        w2=_block_diag(full["w2"], prune["w2"]),
        b2=jnp.concatenate([full["b2"], prune["b2"]], axis=1),
        gamma=jnp.concatenate([full["gamma"], prune["gamma"]], axis=1),
        beta=jnp.concatenate([full["beta"], prune["beta"]], axis=1),
    )


class NodeTextCLModelPallas:
    def __init__(self, key, *, feature_dim, hidden_dim=32, text_embedding=32,
                 node_embedding=32, projection_dim=32, vocab_size=64, temperature=1.0,
                 row_tile=None):
        ks = jax.random.split(key, 10)
        self.temperature = float(temperature)
        self.node_embedding = node_embedding
        self.projection_dim = projection_dim
        self.row_tile = row_tile

        # TODO(synk): reference TextEncoder is a pretrained language model; stand-in =
        # deterministic token-embedding table + attention-masked mean pooling.
        self.tok_emb = jax.random.normal(ks[0], (vocab_size, text_embedding), jnp.float32) * 0.1
        self.text_projection = init_projection_head(ks[1], text_embedding, projection_dim)

        # full-graph branch
        fp_w = jax.random.normal(ks[2], (feature_dim, hidden_dim), jnp.float32) / jnp.sqrt(float(feature_dim))
        fp_b = jnp.zeros((hidden_dim,), jnp.float32)
        gcn_w1 = jax.random.normal(ks[3], (hidden_dim, hidden_dim), jnp.float32) / jnp.sqrt(float(hidden_dim))
        gcn_w2 = jax.random.normal(ks[4], (hidden_dim, node_embedding), jnp.float32) / jnp.sqrt(float(hidden_dim))
        head_full = init_projection_head(ks[5], node_embedding, projection_dim)

        # pruned-graph branch
        fp_pw = jax.random.normal(ks[6], (feature_dim, hidden_dim), jnp.float32) / jnp.sqrt(float(feature_dim))
        fp_pb = jnp.zeros((hidden_dim,), jnp.float32)
        gcn_pw1 = jax.random.normal(ks[7], (hidden_dim, hidden_dim), jnp.float32) / jnp.sqrt(float(hidden_dim))
        gcn_pw2 = jax.random.normal(ks[8], (hidden_dim, node_embedding), jnp.float32) / jnp.sqrt(float(hidden_dim))
        head_prune = init_projection_head(ks[9], node_embedding, projection_dim)

        # ---- branch-merged parameters, built ONCE (column layout everywhere: [full | prune]) ----
        self.fp_w_cat = jnp.concatenate([fp_w, fp_pw], axis=1)                       # (F, 2H)
        self.fp_b_cat = jnp.concatenate([fp_b, fp_pb]).reshape(1, 2 * hidden_dim)    # (1, 2H)
        self.gcn_w1_blk = _block_diag(gcn_w1, gcn_pw1)                               # (2H, 2H)
        self.gcn_w2_blk = _block_diag(gcn_w2, gcn_pw2)                               # (2H, 2E)
        self.node_head_cat = _cat_heads(head_full, head_prune)                       # block-diag head

        self._forward = jax.jit(self._forward_impl)

    def text_encoder(self, input_ids, attention_mask):
        tok = jnp.take(self.tok_emb, input_ids, axis=0)   # (B, S, Dt) gather (plain-JAX glue)
        m = attention_mask.astype(jnp.float32)[..., None]
        return (tok * m).sum(axis=1) / jnp.maximum(m.sum(axis=1), 1.0)

    def _forward_impl(self, batch, feature, adj):
        E, P = self.node_embedding, self.projection_dim
        feature = feature.astype(jnp.float32)   # single cast, no-op when already f32
        adj = adj.astype(jnp.float32)

        N = adj.shape[0]
        tm = self.row_tile if self.row_tile is not None else _pick_row_tile(N)
        tk = _pick_k_tile(N)

        # text branch (its projection head is fused into the loss kernel)
        text_features = self.text_encoder(batch["input_ids"], batch["attention_mask"])

        # node branches, merged ([full | prune] columns):
        z1 = fused_featproj(feature, self.fp_w_cat, self.fp_b_cat, self.gcn_w1_blk, row_tile=tm)
        z2 = fused_gcn1(adj, z1, self.gcn_w2_blk, row_tile=tm, k_tile=tk)
        slab = fused_gcn2_heads(adj, z2, self.node_head_cat, proj_dim=P, row_tile=tm, k_tile=tk)
        # slab columns: [0:E]=node_embed, [E:2E]=node_embed_prune, [2E:2E+P]=proj, [2E+P:]=proj_prune

        node_embed = slab[:, :E]
        node_embed_prune = slab[:, E:2 * E]
        proj_batch = slab[batch["entity"], 2 * E:]        # (B, 2P): [proj | proj_prune]

        # TODO(synk): args.pos == True branch (sparse positive-pair loss) not implemented;
        # this reproduces the args.pos == False contrastive path.
        loss = text_and_cl_loss(text_features, self.text_projection, proj_batch,
                                temperature=self.temperature, proj_dim=P)
        return loss, node_embed_prune, node_embed

    def __call__(self, batch, feature, adj):
        return self._forward(batch, feature, adj)


# --------------------------------------------------------------------------------------
if __name__ == "__main__":
    key = jax.random.PRNGKey(0)
    B, S = 8, 8              # batch size, sequence length
    N_NODES, F_DIM = 16, 16  # graph nodes, raw feature dim
    VOCAB = 64

    kid, kmask, kent, kfeat, kadj, kparam = jax.random.split(key, 6)

    input_ids = jax.random.randint(kid, (B, S), 0, VOCAB, dtype=jnp.int32)
    attention_mask = (jax.random.uniform(kmask, (B, S)) > 0.2).astype(jnp.int32)
    attention_mask = attention_mask.at[:, 0].set(1)  # at least one valid token per row
    entity = jax.random.permutation(kent, N_NODES)[:B].astype(jnp.int32)
    feature = jax.random.normal(kfeat, (N_NODES, F_DIM), jnp.float32)

    # symmetric, self-looped, degree-normalized adjacency
    a = (jax.random.uniform(kadj, (N_NODES, N_NODES)) > 0.7).astype(jnp.float32)
    a = jnp.minimum(jnp.maximum(a, a.T) + jnp.eye(N_NODES, dtype=jnp.float32), 1.0)
    dinv = 1.0 / jnp.sqrt(a.sum(axis=1))
    adj = a * dinv[:, None] * dinv[None, :]

    # row_tile=8 exercises a multi-step ("parallel") row grid even at this toy size.
    model = NodeTextCLModelPallas(kparam, feature_dim=F_DIM, temperature=1.0, row_tile=8)
    batch = {"input_ids": input_ids, "attention_mask": attention_mask, "entity": entity}

    loss, node_embed_prune, node_embed = model(batch, feature, adj)
    jax.block_until_ready((loss, node_embed_prune, node_embed))
    assert loss.shape == () and bool(jnp.isfinite(loss))
    assert node_embed_prune.shape == (N_NODES, 32) and node_embed.shape == (N_NODES, 32)
    print("KERNEL_OK")
</pallas_src>

<mosaic_0001>
module attributes {stable_mosaic.version = 11 : i64} {
  func.func @_featproj_kernel(%arg0: i32, %arg1: memref<8x16xf32, #tpu.memory_space<vmem>>, %arg2: memref<16x64xf32, #tpu.memory_space<vmem>>, %arg3: memref<1x64xf32, #tpu.memory_space<vmem>>, %arg4: memref<64x64xf32, #tpu.memory_space<vmem>>, %arg5: memref<8x64xf32, #tpu.memory_space<vmem>>) attributes {dimension_semantics = [#tpu.dimension_semantics<parallel>], iteration_bounds = array<i64: 2>, scalar_prefetch = 0 : i64, scratch_operands = 0 : i64, tpu.core_type = #tpu.core_type<tc>, window_params = [{transform_indices = @transform_0, window_bounds = array<i64: 8, 16>}, {pipeline_mode = #tpu.pipeline_mode<synchronous>, transform_indices = @transform_1, window_bounds = array<i64: 16, 64>}, {pipeline_mode = #tpu.pipeline_mode<synchronous>, transform_indices = @transform_2, window_bounds = array<i64: 1, 64>}, {pipeline_mode = #tpu.pipeline_mode<synchronous>, transform_indices = @transform_3, window_bounds = array<i64: 64, 64>}, {transform_indices = @transform_4, window_bounds = array<i64: 8, 64>}]} {
    %c0 = arith.constant 0 : index
    %c0_0 = arith.constant 0 : index
    %0 = vector.load %arg1[%c0, %c0_0] : memref<8x16xf32, #tpu.memory_space<vmem>>, vector<8x16xf32>
    %c0_1 = arith.constant 0 : index
    %c0_2 = arith.constant 0 : index
    %1 = vector.load %arg2[%c0_1, %c0_2] : memref<16x64xf32, #tpu.memory_space<vmem>>, vector<16x64xf32>
    %cst = arith.constant dense<0.000000e+00> : vector<8x64xf32>
    %2 = tpu.matmul %0, %1, %cst {dimension_numbers = #tpu.dot_dimension_numbers<[1], [0], [0], [1], [0, 0, 1, 1], [], []>} : vector<8x16xf32>, vector<16x64xf32>, vector<8x64xf32> -> vector<8x64xf32>
    %c0_3 = arith.constant 0 : index
    %c0_4 = arith.constant 0 : index
    %3 = vector.load %arg3[%c0_3, %c0_4] : memref<1x64xf32, #tpu.memory_space<vmem>>, vector<1x64xf32>
    %4 = vector.broadcast %3 : vector<1x64xf32> to vector<8x64xf32>
    %5 = arith.addf %2, %4 : vector<8x64xf32>
    %c0_5 = arith.constant 0 : index
    %c0_6 = arith.constant 0 : index
    %6 = vector.load %arg4[%c0_5, %c0_6] : memref<64x64xf32, #tpu.memory_space<vmem>>, vector<64x64xf32>
    %cst_7 = arith.constant dense<0.000000e+00> : vector<8x64xf32>
    %7 = tpu.matmul %5, %6, %cst_7 {dimension_numbers = #tpu.dot_dimension_numbers<[1], [0], [0], [1], [0, 0, 1, 1], [], []>} : vector<8x64xf32>, vector<64x64xf32>, vector<8x64xf32> -> vector<8x64xf32>
    %c0_8 = arith.constant 0 : index
    %c0_9 = arith.constant 0 : index
    %8 = vector.load %arg5[%c0_8, %c0_9] : memref<8x64xf32, #tpu.memory_space<vmem>>, vector<8x64xf32>
    tpu.vector_store %arg5[%c0_8, %c0_9], %7 {strides = array<i32>} : memref<8x64xf32, #tpu.memory_space<vmem>>, vector<8x64xf32>,
    return
  }
  func.func @transform_0(%arg0: i32) -> (i32, i32) {
    %c0_i32 = arith.constant 0 : i32
    %c0_i32_0 = arith.constant 0 : i32
    return %arg0, %c0_i32 : i32, i32
  }
  func.func @transform_1(%arg0: i32) -> (i32, i32) {
    %c0_i32 = arith.constant 0 : i32
    %c0_i32_0 = arith.constant 0 : i32
    %c0_i32_1 = arith.constant 0 : i32
    return %c0_i32, %c0_i32_0 : i32, i32
  }
  func.func @transform_2(%arg0: i32) -> (i32, i32) {
    %c0_i32 = arith.constant 0 : i32
    %c0_i32_0 = arith.constant 0 : i32
    %c0_i32_1 = arith.constant 0 : i32
    return %c0_i32, %c0_i32_0 : i32, i32
  }
  func.func @transform_3(%arg0: i32) -> (i32, i32) {
    %c0_i32 = arith.constant 0 : i32
    %c0_i32_0 = arith.constant 0 : i32
    %c0_i32_1 = arith.constant 0 : i32
    return %c0_i32, %c0_i32_0 : i32, i32
  }
  func.func @transform_4(%arg0: i32) -> (i32, i32) {
    %c0_i32 = arith.constant 0 : i32
    %c0_i32_0 = arith.constant 0 : i32
    return %arg0, %c0_i32 : i32, i32
  }
}

module attributes {stable_mosaic.version = 11 : i64} {
  func.func @_gcn1_kernel(%arg0: i32, %arg1: i32, %arg2: memref<8x16xf32, #tpu.memory_space<vmem>>, %arg3: memref<16x64xf32, #tpu.memory_space<vmem>>, %arg4: memref<64x64xf32, #tpu.memory_space<vmem>>, %arg5: memref<8x64xf32, #tpu.memory_space<vmem>>, %arg6: memref<8x64xf32, #tpu.memory_space<vmem>>) attributes {dimension_semantics = [#tpu.dimension_semantics<parallel>, #tpu.dimension_semantics<arbitrary>], iteration_bounds = array<i64: 2, 1>, scalar_prefetch = 0 : i64, scratch_operands = 1 : i64, tpu.core_type = #tpu.core_type<tc>, window_params = [{transform_indices = @transform_0, window_bounds = array<i64: 8, 16>}, {transform_indices = @transform_1, window_bounds = array<i64: 16, 64>}, {pipeline_mode = #tpu.pipeline_mode<synchronous>, transform_indices = @transform_2, window_bounds = array<i64: 64, 64>}, {transform_indices = @transform_3, window_bounds = array<i64: 8, 64>}]} {
    %c0_i32 = arith.constant 0 : i32
    %0 = arith.cmpi eq, %arg1, %c0_i32 : i32
    %1 = arith.extui %0 : i1 to i32
    %c0_i32_0 = arith.constant 0 : i32
    %2 = arith.cmpi ne, %1, %c0_i32_0 : i32
    scf.if %2 {
      %cst_10 = arith.constant 0.000000e+00 : f32
      %12 = vector.broadcast %cst_10 : f32 to vector<8x64xf32>
      %c0_11 = arith.constant 0 : index
      %c0_12 = arith.constant 0 : index
      %13 = vector.load %arg6[%c0_11, %c0_12] : memref<8x64xf32, #tpu.memory_space<vmem>>, vector<8x64xf32>
      tpu.vector_store %arg6[%c0_11, %c0_12], %12 {strides = array<i32>} : memref<8x64xf32, #tpu.memory_space<vmem>>, vector<8x64xf32>,
    } else {
    }
    %c0 = arith.constant 0 : index
    %c0_1 = arith.constant 0 : index
    %3 = vector.load %arg6[%c0, %c0_1] : memref<8x64xf32, #tpu.memory_space<vmem>>, vector<8x64xf32>
    %c0_2 = arith.constant 0 : index
    %c0_3 = arith.constant 0 : index
    %4 = vector.load %arg2[%c0_2, %c0_3] : memref<8x16xf32, #tpu.memory_space<vmem>>, vector<8x16xf32>
    %c0_4 = arith.constant 0 : index
    %c0_5 = arith.constant 0 : index
    %5 = vector.load %arg3[%c0_4, %c0_5] : memref<16x64xf32, #tpu.memory_space<vmem>>, vector<16x64xf32>
    %cst = arith.constant dense<0.000000e+00> : vector<8x64xf32>
    %6 = tpu.matmul %4, %5, %cst {dimension_numbers = #tpu.dot_dimension_numbers<[1], [0], [0], [1], [0, 0, 1, 1], [], []>} : vector<8x16xf32>, vector<16x64xf32>, vector<8x64xf32> -> vector<8x64xf32>
    %7 = arith.addf %3, %6 : vector<8x64xf32>
    %c0_6 = arith.constant 0 : index
    %c0_7 = arith.constant 0 : index
    %8 = vector.load %arg6[%c0_6, %c0_7] : memref<8x64xf32, #tpu.memory_space<vmem>>, vector<8x64xf32>
    tpu.vector_store %arg6[%c0_6, %c0_7], %7 {strides = array<i32>} : memref<8x64xf32, #tpu.memory_space<vmem>>, vector<8x64xf32>,
    %c0_i32_8 = arith.constant 0 : i32
    %9 = arith.cmpi eq, %arg1, %c0_i32_8 : i32
    %10 = arith.extui %9 : i1 to i32
    %c0_i32_9 = arith.constant 0 : i32
    %11 = arith.cmpi ne, %10, %c0_i32_9 : i32
    scf.if %11 {
      %c0_10 = arith.constant 0 : index
      %c0_11 = arith.constant 0 : index
      %12 = vector.load %arg6[%c0_10, %c0_11] : memref<8x64xf32, #tpu.memory_space<vmem>>, vector<8x64xf32>
      %cst_12 = arith.constant 0.000000e+00 : f32
      %13 = vector.broadcast %cst_12 : f32 to vector<8x64xf32>
      %14 = arith.maximumf %12, %13 : vector<8x64xf32>
      %c0_13 = arith.constant 0 : index
      %c0_14 = arith.constant 0 : index
      %15 = vector.load %arg4[%c0_13, %c0_14] : memref<64x64xf32, #tpu.memory_space<vmem>>, vector<64x64xf32>
      %cst_15 = arith.constant dense<0.000000e+00> : vector<8x64xf32>
      %16 = tpu.matmul %14, %15, %cst_15 {dimension_numbers = #tpu.dot_dimension_numbers<[1], [0], [0], [1], [0, 0, 1, 1], [], []>} : vector<8x64xf32>, vector<64x64xf32>, vector<8x64xf32> -> vector<8x64xf32>
      %c0_16 = arith.constant 0 : index
      %c0_17 = arith.constant 0 : index
      %17 = vector.load %arg5[%c0_16, %c0_17] : memref<8x64xf32, #tpu.memory_space<vmem>>, vector<8x64xf32>
      tpu.vector_store %arg5[%c0_16, %c0_17], %16 {strides = array<i32>} : memref<8x64xf32, #tpu.memory_space<vmem>>, vector<8x64xf32>,
    } else {
    }
    return
  }
  func.func @transform_0(%arg0: i32, %arg1: i32) -> (i32, i32) {
    %c0_i32 = arith.constant 0 : i32
    return %arg0, %arg1 : i32, i32
  }
  func.func @transform_1(%arg0: i32, %arg1: i32) -> (i32, i32) {
    %c0_i32 = arith.constant 0 : i32
    %c0_i32_0 = arith.constant 0 : i32
    return %arg1, %c0_i32 : i32, i32
  }
  func.func @transform_2(%arg0: i32, %arg1: i32) -> (i32, i32) {
    %c0_i32 = arith.constant 0 : i32
    %c0_i32_0 = arith.constant 0 : i32
    %c0_i32_1 = arith.constant 0 : i32
    return %c0_i32, %c0_i32_0 : i32, i32
  }
  func.func @transform_3(%arg0: i32, %arg1: i32) -> (i32, i32) {
    %c0_i32 = arith.constant 0 : i32
    %c0_i32_0 = arith.constant 0 : i32
    return %arg0, %c0_i32 : i32, i32
  }
}

module attributes {stable_mosaic.version = 11 : i64} {
  func.func @_gcn2_heads_kernel(%arg0: i32, %arg1: i32, %arg2: memref<8x16xf32, #tpu.memory_space<vmem>>, %arg3: memref<16x64xf32, #tpu.memory_space<vmem>>, %arg4: memref<64x64xf32, #tpu.memory_space<vmem>>, %arg5: memref<1x64xf32, #tpu.memory_space<vmem>>, %arg6: memref<64x64xf32, #tpu.memory_space<vmem>>, %arg7: memref<1x64xf32, #tpu.memory_space<vmem>>, %arg8: memref<1x64xf32, #tpu.memory_space<vmem>>, %arg9: memref<1x64xf32, #tpu.memory_space<vmem>>, %arg10: memref<8x128xf32, #tpu.memory_space<vmem>>, %arg11: memref<8x64xf32, #tpu.memory_space<vmem>>) attributes {dimension_semantics = [#tpu.dimension_semantics<parallel>, #tpu.dimension_semantics<arbitrary>], iteration_bounds = array<i64: 2, 1>, scalar_prefetch = 0 : i64, scratch_operands = 1 : i64, tpu.core_type = #tpu.core_type<tc>, window_params = [{transform_indices = @transform_0, window_bounds = array<i64: 8, 16>}, {transform_indices = @transform_1, window_bounds = array<i64: 16, 64>}, {pipeline_mode = #tpu.pipeline_mode<synchronous>, transform_indices = @transform_2, window_bounds = array<i64: 64, 64>}, {pipeline_mode = #tpu.pipeline_mode<synchronous>, transform_indices = @transform_3, window_bounds = array<i64: 1, 64>}, {pipeline_mode = #tpu.pipeline_mode<synchronous>, transform_indices = @transform_4, window_bounds = array<i64: 64, 64>}, {pipeline_mode = #tpu.pipeline_mode<synchronous>, transform_indices = @transform_5, window_bounds = array<i64: 1, 64>}, {pipeline_mode = #tpu.pipeline_mode<synchronous>, transform_indices = @transform_6, window_bounds = array<i64: 1, 64>}, {pipeline_mode = #tpu.pipeline_mode<synchronous>, transform_indices = @transform_7, window_bounds = array<i64: 1, 64>}, {transform_indices = @transform_8, window_bounds = array<i64: 8, 128>}]} {
    %c0_i32 = arith.constant 0 : i32
    %0 = arith.cmpi eq, %arg1, %c0_i32 : i32
    %1 = arith.extui %0 : i1 to i32
    %c0_i32_0 = arith.constant 0 : i32
    %2 = arith.cmpi ne, %1, %c0_i32_0 : i32
    scf.if %2 {
      %cst_10 = arith.constant 0.000000e+00 : f32
      %12 = vector.broadcast %cst_10 : f32 to vector<8x64xf32>
      %c0_11 = arith.constant 0 : index
      %c0_12 = arith.constant 0 : index
      %13 = vector.load %arg11[%c0_11, %c0_12] : memref<8x64xf32, #tpu.memory_space<vmem>>, vector<8x64xf32>
      tpu.vector_store %arg11[%c0_11, %c0_12], %12 {strides = array<i32>} : memref<8x64xf32, #tpu.memory_space<vmem>>, vector<8x64xf32>,
    } else {
    }
    %c0 = arith.constant 0 : index
    %c0_1 = arith.constant 0 : index
    %3 = vector.load %arg11[%c0, %c0_1] : memref<8x64xf32, #tpu.memory_space<vmem>>, vector<8x64xf32>
    %c0_2 = arith.constant 0 : index
    %c0_3 = arith.constant 0 : index
    %4 = vector.load %arg2[%c0_2, %c0_3] : memref<8x16xf32, #tpu.memory_space<vmem>>, vector<8x16xf32>
    %c0_4 = arith.constant 0 : index
    %c0_5 = arith.constant 0 : index
    %5 = vector.load %arg3[%c0_4, %c0_5] : memref<16x64xf32, #tpu.memory_space<vmem>>, vector<16x64xf32>
    %cst = arith.constant dense<0.000000e+00> : vector<8x64xf32>
    %6 = tpu.matmul %4, %5, %cst {dimension_numbers = #tpu.dot_dimension_numbers<[1], [0], [0], [1], [0, 0, 1, 1], [], []>} : vector<8x16xf32>, vector<16x64xf32>, vector<8x64xf32> -> vector<8x64xf32>
    %7 = arith.addf %3, %6 : vector<8x64xf32>
    %c0_6 = arith.constant 0 : index
    %c0_7 = arith.constant 0 : index
    %8 = vector.load %arg11[%c0_6, %c0_7] : memref<8x64xf32, #tpu.memory_space<vmem>>, vector<8x64xf32>
    tpu.vector_store %arg11[%c0_6, %c0_7], %7 {strides = array<i32>} : memref<8x64xf32, #tpu.memory_space<vmem>>, vector<8x64xf32>,
    %c0_i32_8 = arith.constant 0 : i32
    %9 = arith.cmpi eq, %arg1, %c0_i32_8 : i32
    %10 = arith.extui %9 : i1 to i32
    %c0_i32_9 = arith.constant 0 : i32
    %11 = arith.cmpi ne, %10, %c0_i32_9 : i32
    scf.if %11 {
      %c0_10 = arith.constant 0 : index
      %c0_11 = arith.constant 0 : index
      %12 = vector.load %arg11[%c0_10, %c0_11] : memref<8x64xf32, #tpu.memory_space<vmem>>, vector<8x64xf32>
      %c0_12 = arith.constant 0 : index
      %c0_13 = arith.constant 0 : index
      %13 = vector.load %arg4[%c0_12, %c0_13] : memref<64x64xf32, #tpu.memory_space<vmem>>, vector<64x64xf32>
      %c0_14 = arith.constant 0 : index
      %c0_15 = arith.constant 0 : index
      %14 = vector.load %arg5[%c0_14, %c0_15] : memref<1x64xf32, #tpu.memory_space<vmem>>, vector<1x64xf32>
      %c0_16 = arith.constant 0 : index
      %c0_17 = arith.constant 0 : index
      %15 = vector.load %arg6[%c0_16, %c0_17] : memref<64x64xf32, #tpu.memory_space<vmem>>, vector<64x64xf32>
      %c0_18 = arith.constant 0 : index
      %c0_19 = arith.constant 0 : index
      %16 = vector.load %arg7[%c0_18, %c0_19] : memref<1x64xf32, #tpu.memory_space<vmem>>, vector<1x64xf32>
      %c0_20 = arith.constant 0 : index
      %c0_21 = arith.constant 0 : index
      %17 = vector.load %arg8[%c0_20, %c0_21] : memref<1x64xf32, #tpu.memory_space<vmem>>, vector<1x64xf32>
      %c0_22 = arith.constant 0 : index
      %c0_23 = arith.constant 0 : index
      %18 = vector.load %arg9[%c0_22, %c0_23] : memref<1x64xf32, #tpu.memory_space<vmem>>, vector<1x64xf32>
      %cst_24 = arith.constant dense<0.000000e+00> : vector<8x64xf32>
      %19 = tpu.matmul %12, %13, %cst_24 {dimension_numbers = #tpu.dot_dimension_numbers<[1], [0], [0], [1], [0, 0, 1, 1], [], []>} : vector<8x64xf32>, vector<64x64xf32>, vector<8x64xf32> -> vector<8x64xf32>
      %20 = vector.broadcast %14 : vector<1x64xf32> to vector<8x64xf32>
      %21 = arith.addf %19, %20 : vector<8x64xf32>
      %cst_25 = arith.constant 5.000000e-01 : f32
      %22 = vector.broadcast %cst_25 : f32 to vector<8x64xf32>
      %23 = arith.mulf %22, %21 : vector<8x64xf32>
      %cst_26 = arith.constant 4.471500e-02 : f32
      %24 = vector.broadcast %cst_26 : f32 to vector<8x64xf32>
      %25 = arith.mulf %24, %21 : vector<8x64xf32>
      %26 = arith.mulf %25, %21 : vector<8x64xf32>
      %27 = arith.mulf %26, %21 : vector<8x64xf32>
      %28 = arith.addf %21, %27 : vector<8x64xf32>
      %cst_27 = arith.constant 0.797884583 : f32
      %29 = vector.broadcast %cst_27 : f32 to vector<8x64xf32>
      %30 = arith.mulf %29, %28 : vector<8x64xf32>
      %31 = math.tanh %30 : vector<8x64xf32>
      %cst_28 = arith.constant 1.000000e+00 : f32
      %32 = vector.broadcast %cst_28 : f32 to vector<8x64xf32>
      %33 = arith.addf %32, %31 : vector<8x64xf32>
      %34 = arith.mulf %23, %33 : vector<8x64xf32>
      %cst_29 = arith.constant dense<0.000000e+00> : vector<8x64xf32>
      %35 = tpu.matmul %34, %15, %cst_29 {dimension_numbers = #tpu.dot_dimension_numbers<[1], [0], [0], [1], [0, 0, 1, 1], [], []>} : vector<8x64xf32>, vector<64x64xf32>, vector<8x64xf32> -> vector<8x64xf32>
      %36 = vector.broadcast %16 : vector<1x64xf32> to vector<8x64xf32>
      %37 = arith.addf %35, %36 : vector<8x64xf32>
      %38 = arith.addf %37, %21 : vector<8x64xf32>
      %39 = vector.extract_strided_slice %38 {offsets = [0, 0], sizes = [8, 32], strides = [1, 1]} : vector<8x64xf32> to vector<8x32xf32>
      %cst_30 = arith.constant dense<0.000000e+00> : vector<8xf32>
      %40 = vector.multi_reduction <add>, %39, %cst_30 [1] : vector<8x32xf32> to vector<8xf32>
      %41 = vector.shape_cast %40 : vector<8xf32> to vector<8x1xf32>
      %cst_31 = arith.constant 3.200000e+01 : f32
      %42 = vector.broadcast %cst_31 : f32 to vector<8x1xf32>
      %43 = arith.divf %41, %42 : vector<8x1xf32>
      %44 = vector.broadcast %43 : vector<8x1xf32> to vector<8x32xf32>
      %45 = arith.subf %39, %44 : vector<8x32xf32>
      %46 = arith.mulf %45, %45 : vector<8x32xf32>
      %cst_32 = arith.constant dense<0.000000e+00> : vector<8xf32>
      %47 = vector.multi_reduction <add>, %46, %cst_32 [1] : vector<8x32xf32> to vector<8xf32>
      %48 = vector.shape_cast %47 : vector<8xf32> to vector<8x1xf32>
      %cst_33 = arith.constant 3.200000e+01 : f32
      %49 = vector.broadcast %cst_33 : f32 to vector<8x1xf32>
      %50 = arith.divf %48, %49 : vector<8x1xf32>
      %51 = vector.broadcast %43 : vector<8x1xf32> to vector<8x32xf32>
      %52 = arith.subf %39, %51 : vector<8x32xf32>
      %cst_34 = arith.constant 9.99999974E-6 : f32
      %53 = vector.broadcast %cst_34 : f32 to vector<8x1xf32>
      %54 = arith.addf %50, %53 : vector<8x1xf32>
      %55 = math.rsqrt %54 : vector<8x1xf32>
      %56 = vector.broadcast %55 : vector<8x1xf32> to vector<8x32xf32>
      %57 = arith.mulf %52, %56 : vector<8x32xf32>
      %58 = vector.extract_strided_slice %38 {offsets = [0, 32], sizes = [8, 32], strides = [1, 1]} : vector<8x64xf32> to vector<8x32xf32>
      %cst_35 = arith.constant dense<0.000000e+00> : vector<8xf32>
      %59 = vector.multi_reduction <add>, %58, %cst_35 [1] : vector<8x32xf32> to vector<8xf32>
      %60 = vector.shape_cast %59 : vector<8xf32> to vector<8x1xf32>
      %cst_36 = arith.constant 3.200000e+01 : f32
      %61 = vector.broadcast %cst_36 : f32 to vector<8x1xf32>
      %62 = arith.divf %60, %61 : vector<8x1xf32>
      %63 = vector.broadcast %62 : vector<8x1xf32> to vector<8x32xf32>
      %64 = arith.subf %58, %63 : vector<8x32xf32>
      %65 = arith.mulf %64, %64 : vector<8x32xf32>
      %cst_37 = arith.constant dense<0.000000e+00> : vector<8xf32>
      %66 = vector.multi_reduction <add>, %65, %cst_37 [1] : vector<8x32xf32> to vector<8xf32>
      %67 = vector.shape_cast %66 : vector<8xf32> to vector<8x1xf32>
      %cst_38 = arith.constant 3.200000e+01 : f32
      %68 = vector.broadcast %cst_38 : f32 to vector<8x1xf32>
      %69 = arith.divf %67, %68 : vector<8x1xf32>
      %70 = vector.broadcast %62 : vector<8x1xf32> to vector<8x32xf32>
      %71 = arith.subf %58, %70 : vector<8x32xf32>
      %cst_39 = arith.constant 9.99999974E-6 : f32
      %72 = vector.broadcast %cst_39 : f32 to vector<8x1xf32>
      %73 = arith.addf %69, %72 : vector<8x1xf32>
      %74 = math.rsqrt %73 : vector<8x1xf32>
      %75 = vector.broadcast %74 : vector<8x1xf32> to vector<8x32xf32>
      %76 = arith.mulf %71, %75 : vector<8x32xf32>
      %77 = tpu.concatenate %57, %76 in 1 : vector<8x32xf32>, vector<8x32xf32> -> vector<8x64xf32>
      %78 = vector.broadcast %17 : vector<1x64xf32> to vector<8x64xf32>
      %79 = arith.mulf %77, %78 : vector<8x64xf32>
      %80 = vector.broadcast %18 : vector<1x64xf32> to vector<8x64xf32>
      %81 = arith.addf %79, %80 : vector<8x64xf32>
      %82 = tpu.concatenate %12, %81 in 1 : vector<8x64xf32>, vector<8x64xf32> -> vector<8x128xf32>
      %c0_40 = arith.constant 0 : index
      %c0_41 = arith.constant 0 : index
      %83 = vector.load %arg10[%c0_40, %c0_41] : memref<8x128xf32, #tpu.memory_space<vmem>>, vector<8x128xf32>
      tpu.vector_store %arg10[%c0_40, %c0_41], %82 {strides = array<i32>} : memref<8x128xf32, #tpu.memory_space<vmem>>, vector<8x128xf32>,
    } else {
    }
    return
  }
  func.func @transform_0(%arg0: i32, %arg1: i32) -> (i32, i32) {
    %c0_i32 = arith.constant 0 : i32
    return %arg0, %arg1 : i32, i32
  }
  func.func @transform_1(%arg0: i32, %arg1: i32) -> (i32, i32) {
    %c0_i32 = arith.constant 0 : i32
    %c0_i32_0 = arith.constant 0 : i32
    return %arg1, %c0_i32 : i32, i32
  }
  func.func @transform_2(%arg0: i32, %arg1: i32) -> (i32, i32) {
    %c0_i32 = arith.constant 0 : i32
    %c0_i32_0 = arith.constant 0 : i32
    %c0_i32_1 = arith.constant 0 : i32
    return %c0_i32, %c0_i32_0 : i32, i32
  }
  func.func @transform_3(%arg0: i32, %arg1: i32) -> (i32, i32) {
    %c0_i32 = arith.constant 0 : i32
    %c0_i32_0 = arith.constant 0 : i32
    %c0_i32_1 = arith.constant 0 : i32
    return %c0_i32, %c0_i32_0 : i32, i32
  }
  func.func @transform_4(%arg0: i32, %arg1: i32) -> (i32, i32) {
    %c0_i32 = arith.constant 0 : i32
    %c0_i32_0 = arith.constant 0 : i32
    %c0_i32_1 = arith.constant 0 : i32
    return %c0_i32, %c0_i32_0 : i32, i32
  }
  func.func @transform_5(%arg0: i32, %arg1: i32) -> (i32, i32) {
    %c0_i32 = arith.constant 0 : i32
    %c0_i32_0 = arith.constant 0 : i32
    %c0_i32_1 = arith.constant 0 : i32
    return %c0_i32, %c0_i32_0 : i32, i32
  }
  func.func @transform_6(%arg0: i32, %arg1: i32) -> (i32, i32) {
    %c0_i32 = arith.constant 0 : i32
    %c0_i32_0 = arith.constant 0 : i32
    %c0_i32_1 = arith.constant 0 : i32
    return %c0_i32, %c0_i32_0 : i32, i32
  }
  func.func @transform_7(%arg0: i32, %arg1: i32) -> (i32, i32) {
    %c0_i32 = arith.constant 0 : i32
    %c0_i32_0 = arith.constant 0 : i32
    %c0_i32_1 = arith.constant 0 : i32
    return %c0_i32, %c0_i32_0 : i32, i32
  }
  func.func @transform_8(%arg0: i32, %arg1: i32) -> (i32, i32) {
    %c0_i32 = arith.constant 0 : i32
    %c0_i32_0 = arith.constant 0 : i32
    return %arg0, %c0_i32 : i32, i32
  }
}

module attributes {stable_mosaic.version = 11 : i64} {
  func.func @_text_loss_kernel(%arg0: memref<8x32xf32, #tpu.memory_space<vmem>>, %arg1: memref<32x32xf32, #tpu.memory_space<vmem>>, %arg2: memref<1x32xf32, #tpu.memory_space<vmem>>, %arg3: memref<32x32xf32, #tpu.memory_space<vmem>>, %arg4: memref<1x32xf32, #tpu.memory_space<vmem>>, %arg5: memref<1x32xf32, #tpu.memory_space<vmem>>, %arg6: memref<1x32xf32, #tpu.memory_space<vmem>>, %arg7: memref<8x64xf32, #tpu.memory_space<vmem>>, %arg8: memref<1x1xf32, #tpu.memory_space<smem>>) attributes {dimension_semantics = [], scalar_prefetch = 0 : i64, scratch_operands = 0 : i64, tpu.core_type = #tpu.core_type<tc>} {
    %c0 = arith.constant 0 : index
    %c0_0 = arith.constant 0 : index
    %0 = vector.load %arg0[%c0, %c0_0] : memref<8x32xf32, #tpu.memory_space<vmem>>, vector<8x32xf32>
    %c0_1 = arith.constant 0 : index
    %c0_2 = arith.constant 0 : index
    %1 = vector.load %arg1[%c0_1, %c0_2] : memref<32x32xf32, #tpu.memory_space<vmem>>, vector<32x32xf32>
    %c0_3 = arith.constant 0 : index
    %c0_4 = arith.constant 0 : index
    %2 = vector.load %arg2[%c0_3, %c0_4] : memref<1x32xf32, #tpu.memory_space<vmem>>, vector<1x32xf32>
    %c0_5 = arith.constant 0 : index
    %c0_6 = arith.constant 0 : index
    %3 = vector.load %arg3[%c0_5, %c0_6] : memref<32x32xf32, #tpu.memory_space<vmem>>, vector<32x32xf32>
    %c0_7 = arith.constant 0 : index
    %c0_8 = arith.constant 0 : index
    %4 = vector.load %arg4[%c0_7, %c0_8] : memref<1x32xf32, #tpu.memory_space<vmem>>, vector<1x32xf32>
    %c0_9 = arith.constant 0 : index
    %c0_10 = arith.constant 0 : index
    %5 = vector.load %arg5[%c0_9, %c0_10] : memref<1x32xf32, #tpu.memory_space<vmem>>, vector<1x32xf32>
    %c0_11 = arith.constant 0 : index
    %c0_12 = arith.constant 0 : index
    %6 = vector.load %arg6[%c0_11, %c0_12] : memref<1x32xf32, #tpu.memory_space<vmem>>, vector<1x32xf32>
    %cst = arith.constant dense<0.000000e+00> : vector<8x32xf32>
    %7 = tpu.matmul %0, %1, %cst {dimension_numbers = #tpu.dot_dimension_numbers<[1], [0], [0], [1], [0, 0, 1, 1], [], []>} : vector<8x32xf32>, vector<32x32xf32>, vector<8x32xf32> -> vector<8x32xf32>
    %8 = vector.broadcast %2 : vector<1x32xf32> to vector<8x32xf32>
    %9 = arith.addf %7, %8 : vector<8x32xf32>
    %cst_13 = arith.constant 5.000000e-01 : f32
    %10 = vector.broadcast %cst_13 : f32 to vector<8x32xf32>
    %11 = arith.mulf %10, %9 : vector<8x32xf32>
    %cst_14 = arith.constant 4.471500e-02 : f32
    %12 = vector.broadcast %cst_14 : f32 to vector<8x32xf32>
    %13 = arith.mulf %12, %9 : vector<8x32xf32>
    %14 = arith.mulf %13, %9 : vector<8x32xf32>
    %15 = arith.mulf %14, %9 : vector<8x32xf32>
    %16 = arith.addf %9, %15 : vector<8x32xf32>
    %cst_15 = arith.constant 0.797884583 : f32
    %17 = vector.broadcast %cst_15 : f32 to vector<8x32xf32>
    %18 = arith.mulf %17, %16 : vector<8x32xf32>
    %19 = math.tanh %18 : vector<8x32xf32>
    %cst_16 = arith.constant 1.000000e+00 : f32
    %20 = vector.broadcast %cst_16 : f32 to vector<8x32xf32>
    %21 = arith.addf %20, %19 : vector<8x32xf32>
    %22 = arith.mulf %11, %21 : vector<8x32xf32>
    %cst_17 = arith.constant dense<0.000000e+00> : vector<8x32xf32>
    %23 = tpu.matmul %22, %3, %cst_17 {dimension_numbers = #tpu.dot_dimension_numbers<[1], [0], [0], [1], [0, 0, 1, 1], [], []>} : vector<8x32xf32>, vector<32x32xf32>, vector<8x32xf32> -> vector<8x32xf32>
    %24 = vector.broadcast %4 : vector<1x32xf32> to vector<8x32xf32>
    %25 = arith.addf %23, %24 : vector<8x32xf32>
    %26 = arith.addf %25, %9 : vector<8x32xf32>
    %cst_18 = arith.constant dense<0.000000e+00> : vector<8xf32>
    %27 = vector.multi_reduction <add>, %26, %cst_18 [1] : vector<8x32xf32> to vector<8xf32>
    %28 = vector.shape_cast %27 : vector<8xf32> to vector<8x1xf32>
    %cst_19 = arith.constant 3.200000e+01 : f32
    %29 = vector.broadcast %cst_19 : f32 to vector<8x1xf32>
    %30 = arith.divf %28, %29 : vector<8x1xf32>
    %31 = vector.broadcast %30 : vector<8x1xf32> to vector<8x32xf32>
    %32 = arith.subf %26, %31 : vector<8x32xf32>
    %33 = arith.mulf %32, %32 : vector<8x32xf32>
    %cst_20 = arith.constant dense<0.000000e+00> : vector<8xf32>
    %34 = vector.multi_reduction <add>, %33, %cst_20 [1] : vector<8x32xf32> to vector<8xf32>
    %35 = vector.shape_cast %34 : vector<8xf32> to vector<8x1xf32>
    %cst_21 = arith.constant 3.200000e+01 : f32
    %36 = vector.broadcast %cst_21 : f32 to vector<8x1xf32>
    %37 = arith.divf %35, %36 : vector<8x1xf32>
    %38 = vector.broadcast %30 : vector<8x1xf32> to vector<8x32xf32>
    %39 = arith.subf %26, %38 : vector<8x32xf32>
    %cst_22 = arith.constant 9.99999974E-6 : f32
    %40 = vector.broadcast %cst_22 : f32 to vector<8x1xf32>
    %41 = arith.addf %37, %40 : vector<8x1xf32>
    %42 = math.rsqrt %41 : vector<8x1xf32>
    %43 = vector.broadcast %42 : vector<8x1xf32> to vector<8x32xf32>
    %44 = arith.mulf %39, %43 : vector<8x32xf32>
    %45 = vector.broadcast %5 : vector<1x32xf32> to vector<8x32xf32>
    %46 = arith.mulf %44, %45 : vector<8x32xf32>
    %47 = vector.broadcast %6 : vector<1x32xf32> to vector<8x32xf32>
    %48 = arith.addf %46, %47 : vector<8x32xf32>
    %c0_23 = arith.constant 0 : index
    %c0_24 = arith.constant 0 : index
    %49 = vector.load %arg7[%c0_23, %c0_24] : memref<8x64xf32, #tpu.memory_space<vmem>>, vector<8x32xf32>
    %c0_25 = arith.constant 0 : index
    %c32 = arith.constant 32 : index
    %50 = vector.load %arg7[%c0_25, %c32] : memref<8x64xf32, #tpu.memory_space<vmem>>, vector<8x32xf32>
    %cst_26 = arith.constant dense<0.000000e+00> : vector<8x8xf32>
    %51 = tpu.matmul %50, %48, %cst_26 {dimension_numbers = #tpu.dot_dimension_numbers<[1], [1], [0], [0], [0, 0, 1, 0], [], []>} : vector<8x32xf32>, vector<8x32xf32>, vector<8x8xf32> -> vector<8x8xf32>
    %cst_27 = arith.constant 1.000000e+00 : f32
    %52 = vector.broadcast %cst_27 : f32 to vector<8x8xf32>
    %53 = arith.mulf %51, %52 : vector<8x8xf32>
    %cst_28 = arith.constant dense<0.000000e+00> : vector<8x8xf32>
    %54 = tpu.matmul %48, %48, %cst_28 {dimension_numbers = #tpu.dot_dimension_numbers<[1], [1], [0], [0], [0, 0, 1, 0], [], []>} : vector<8x32xf32>, vector<8x32xf32>, vector<8x8xf32> -> vector<8x8xf32>
    %cst_29 = arith.constant dense<0.000000e+00> : vector<8x8xf32>
    %55 = tpu.matmul %50, %50, %cst_29 {dimension_numbers = #tpu.dot_dimension_numbers<[1], [1], [0], [0], [0, 0, 1, 0], [], []>} : vector<8x32xf32>, vector<8x32xf32>, vector<8x8xf32> -> vector<8x8xf32>
    %56 = arith.addf %54, %55 : vector<8x8xf32>
    %cst_30 = arith.constant 5.000000e-01 : f32
    %57 = vector.broadcast %cst_30 : f32 to vector<8x8xf32>
    %58 = arith.mulf %56, %57 : vector<8x8xf32>
    %cst_31 = arith.constant dense<0xFF800000> : vector<8xf32>
    %59 = vector.multi_reduction <maximumf>, %58, %cst_31 [1] : vector<8x8xf32> to vector<8xf32>
    %60 = vector.shape_cast %59 : vector<8xf32> to vector<8x1xf32>
    %61 = vector.broadcast %60 : vector<8x1xf32> to vector<8x8xf32>
    %62 = arith.subf %58, %61 : vector<8x8xf32>
    %63 = math.exp %62 : vector<8x8xf32>
    %cst_32 = arith.constant dense<0.000000e+00> : vector<8xf32>
    %64 = vector.multi_reduction <add>, %63, %cst_32 [1] : vector<8x8xf32> to vector<8xf32>
    %65 = vector.shape_cast %64 : vector<8xf32> to vector<8x1xf32>
    %66 = tpu.reciprocal %65 {approx = true} : vector<8x1xf32> -> vector<8x1xf32>
    %67 = vector.broadcast %66 : vector<8x1xf32> to vector<8x8xf32>
    %68 = arith.mulf %63, %67 : vector<8x8xf32>
    %cst_33 = arith.constant dense<0xFF800000> : vector<8xf32>
    %69 = vector.multi_reduction <maximumf>, %53, %cst_33 [1] : vector<8x8xf32> to vector<8xf32>
    %70 = vector.shape_cast %69 : vector<8xf32> to vector<8x1xf32>
    %71 = vector.broadcast %70 : vector<8x1xf32> to vector<8x8xf32>
    %72 = arith.subf %53, %71 : vector<8x8xf32>
    %73 = math.exp %72 : vector<8x8xf32>
    %cst_34 = arith.constant dense<0.000000e+00> : vector<8xf32>
    %74 = vector.multi_reduction <add>, %73, %cst_34 [1] : vector<8x8xf32> to vector<8xf32>
    %75 = vector.shape_cast %74 : vector<8xf32> to vector<8x1xf32>
    %76 = math.log %75 : vector<8x1xf32>
    %77 = arith.addf %70, %76 : vector<8x1xf32>
    %cst_35 = arith.constant dense<0xFF800000> : vector<8xf32>
    %78 = vector.multi_reduction <maximumf>, %53, %cst_35 [0] : vector<8x8xf32> to vector<8xf32>
    %79 = vector.shape_cast %78 : vector<8xf32> to vector<1x8xf32>
    %80 = vector.broadcast %79 : vector<1x8xf32> to vector<8x8xf32>
    %81 = arith.subf %53, %80 : vector<8x8xf32>
    %82 = math.exp %81 : vector<8x8xf32>
    %cst_36 = arith.constant dense<0.000000e+00> : vector<8xf32>
    %83 = vector.multi_reduction <add>, %82, %cst_36 [0] : vector<8x8xf32> to vector<8xf32>
    %84 = vector.shape_cast %83 : vector<8xf32> to vector<1x8xf32>
    %85 = math.log %84 : vector<1x8xf32>
    %86 = arith.addf %79, %85 : vector<1x8xf32>
    %87 = arith.mulf %68, %53 : vector<8x8xf32>
    %88 = vector.shape_cast %87 : vector<8x8xf32> to vector<1x8x8xf32>
    %cst_37 = arith.constant dense<0.000000e+00> : vector<1xf32>
    %89 = vector.multi_reduction <add>, %88, %cst_37 [1, 2] : vector<1x8x8xf32> to vector<1xf32>
    %90 = vector.shape_cast %89 : vector<1xf32> to vector<1x1x1xf32>
    %91 = vector.extract %90[0, 0, 0] : f32 from vector<1x1x1xf32>
    %cst_38 = arith.constant dense<0.000000e+00> : vector<8xf32>
    %92 = vector.multi_reduction <add>, %68, %cst_38 [1] : vector<8x8xf32> to vector<8xf32>
    %93 = vector.shape_cast %92 : vector<8xf32> to vector<8x1xf32>
    %94 = arith.mulf %77, %93 : vector<8x1xf32>
    %95 = vector.shape_cast %94 : vector<8x1xf32> to vector<1x8x1xf32>
    %cst_39 = arith.constant dense<0.000000e+00> : vector<1xf32>
    %96 = vector.multi_reduction <add>, %95, %cst_39 [1, 2] : vector<1x8x1xf32> to vector<1xf32>
    %97 = vector.shape_cast %96 : vector<1xf32> to vector<1x1x1xf32>
    %98 = vector.extract %97[0, 0, 0] : f32 from vector<1x1x1xf32>
    %99 = arith.subf %98, %91 : f32
    %cst_40 = arith.constant dense<0.000000e+00> : vector<8xf32>
    %100 = vector.multi_reduction <add>, %68, %cst_40 [0] : vector<8x8xf32> to vector<8xf32>
    %101 = vector.shape_cast %100 : vector<8xf32> to vector<1x8xf32>
    %102 = arith.mulf %86, %101 : vector<1x8xf32>
    %103 = vector.shape_cast %102 : vector<1x8xf32> to vector<1x1x8xf32>
    %cst_41 = arith.constant dense<0.000000e+00> : vector<1xf32>
    %104 = vector.multi_reduction <add>, %103, %cst_41 [1, 2] : vector<1x1x8xf32> to vector<1xf32>
    %105 = vector.shape_cast %104 : vector<1xf32> to vector<1x1x1xf32>
    %106 = vector.extract %105[0, 0, 0] : f32 from vector<1x1x1xf32>
    %107 = arith.subf %106, %91 : f32
    %cst_42 = arith.constant dense<0.000000e+00> : vector<8x8xf32>
    %108 = tpu.matmul %49, %50, %cst_42 {dimension_numbers = #tpu.dot_dimension_numbers<[1], [1], [0], [0], [0, 0, 1, 0], [], []>} : vector<8x32xf32>, vector<8x32xf32>, vector<8x8xf32> -> vector<8x8xf32>
    %cst_43 = arith.constant 1.000000e+00 : f32
    %109 = vector.broadcast %cst_43 : f32 to vector<8x8xf32>
    %110 = arith.mulf %108, %109 : vector<8x8xf32>
    %cst_44 = arith.constant dense<0.000000e+00> : vector<8x8xf32>
    %111 = tpu.matmul %49, %49, %cst_44 {dimension_numbers = #tpu.dot_dimension_numbers<[1], [1], [0], [0], [0, 0, 1, 0], [], []>} : vector<8x32xf32>, vector<8x32xf32>, vector<8x8xf32> -> vector<8x8xf32>
    %112 = arith.addf %55, %111 : vector<8x8xf32>
    %cst_45 = arith.constant 5.000000e-01 : f32
    %113 = vector.broadcast %cst_45 : f32 to vector<8x8xf32>
    %114 = arith.mulf %112, %113 : vector<8x8xf32>
    %cst_46 = arith.constant dense<0xFF800000> : vector<8xf32>
    %115 = vector.multi_reduction <maximumf>, %114, %cst_46 [1] : vector<8x8xf32> to vector<8xf32>
    %116 = vector.shape_cast %115 : vector<8xf32> to vector<8x1xf32>
    %117 = vector.broadcast %116 : vector<8x1xf32> to vector<8x8xf32>
    %118 = arith.subf %114, %117 : vector<8x8xf32>
    %119 = math.exp %118 : vector<8x8xf32>
    %cst_47 = arith.constant dense<0.000000e+00> : vector<8xf32>
    %120 = vector.multi_reduction <add>, %119, %cst_47 [1] : vector<8x8xf32> to vector<8xf32>
    %121 = vector.shape_cast %120 : vector<8xf32> to vector<8x1xf32>
    %122 = tpu.reciprocal %121 {approx = true} : vector<8x1xf32> -> vector<8x1xf32>
    %123 = vector.broadcast %122 : vector<8x1xf32> to vector<8x8xf32>
    %124 = arith.mulf %119, %123 : vector<8x8xf32>
    %cst_48 = arith.constant dense<0xFF800000> : vector<8xf32>
    %125 = vector.multi_reduction <maximumf>, %110, %cst_48 [1] : vector<8x8xf32> to vector<8xf32>
    %126 = vector.shape_cast %125 : vector<8xf32> to vector<8x1xf32>
    %127 = vector.broadcast %126 : vector<8x1xf32> to vector<8x8xf32>
    %128 = arith.subf %110, %127 : vector<8x8xf32>
    %129 = math.exp %128 : vector<8x8xf32>
    %cst_49 = arith.constant dense<0.000000e+00> : vector<8xf32>
    %130 = vector.multi_reduction <add>, %129, %cst_49 [1] : vector<8x8xf32> to vector<8xf32>
    %131 = vector.shape_cast %130 : vector<8xf32> to vector<8x1xf32>
    %132 = math.log %131 : vector<8x1xf32>
    %133 = arith.addf %126, %132 : vector<8x1xf32>
    %cst_50 = arith.constant dense<0xFF800000> : vector<8xf32>
    %134 = vector.multi_reduction <maximumf>, %110, %cst_50 [0] : vector<8x8xf32> to vector<8xf32>
    %135 = vector.shape_cast %134 : vector<8xf32> to vector<1x8xf32>
    %136 = vector.broadcast %135 : vector<1x8xf32> to vector<8x8xf32>
    %137 = arith.subf %110, %136 : vector<8x8xf32>
    %138 = math.exp %137 : vector<8x8xf32>
    %cst_51 = arith.constant dense<0.000000e+00> : vector<8xf32>
    %139 = vector.multi_reduction <add>, %138, %cst_51 [0] : vector<8x8xf32> to vector<8xf32>
    %140 = vector.shape_cast %139 : vector<8xf32> to vector<1x8xf32>
    %141 = math.log %140 : vector<1x8xf32>
    %142 = arith.addf %135, %141 : vector<1x8xf32>
    %143 = arith.mulf %124, %110 : vector<8x8xf32>
    %144 = vector.shape_cast %143 : vector<8x8xf32> to vector<1x8x8xf32>
    %cst_52 = arith.constant dense<0.000000e+00> : vector<1xf32>
    %145 = vector.multi_reduction <add>, %144, %cst_52 [1, 2] : vector<1x8x8xf32> to vector<1xf32>
    %146 = vector.shape_cast %145 : vector<1xf32> to vector<1x1x1xf32>
    %147 = vector.extract %146[0, 0, 0] : f32 from vector<1x1x1xf32>
    %cst_53 = arith.constant dense<0.000000e+00> : vector<8xf32>
    %148 = vector.multi_reduction <add>, %124, %cst_53 [1] : vector<8x8xf32> to vector<8xf32>
    %149 = vector.shape_cast %148 : vector<8xf32> to vector<8x1xf32>
    %150 = arith.mulf %133, %149 : vector<8x1xf32>
    %151 = vector.shape_cast %150 : vector<8x1xf32> to vector<1x8x1xf32>
    %cst_54 = arith.constant dense<0.000000e+00> : vector<1xf32>
    %152 = vector.multi_reduction <add>, %151, %cst_54 [1, 2] : vector<1x8x1xf32> to vector<1xf32>
    %153 = vector.shape_cast %152 : vector<1xf32> to vector<1x1x1xf32>
    %154 = vector.extract %153[0, 0, 0] : f32 from vector<1x1x1xf32>
    %155 = arith.subf %154, %147 : f32
    %cst_55 = arith.constant dense<0.000000e+00> : vector<8xf32>
    %156 = vector.multi_reduction <add>, %124, %cst_55 [0] : vector<8x8xf32> to vector<8xf32>
    %157 = vector.shape_cast %156 : vector<8xf32> to vector<1x8xf32>
    %158 = arith.mulf %142, %157 : vector<1x8xf32>
    %159 = vector.shape_cast %158 : vector<1x8xf32> to vector<1x1x8xf32>
    %cst_56 = arith.constant dense<0.000000e+00> : vector<1xf32>
    %160 = vector.multi_reduction <add>, %159, %cst_56 [1, 2] : vector<1x1x8xf32> to vector<1xf32>
    %161 = vector.shape_cast %160 : vector<1xf32> to vector<1x1x1xf32>
    %162 = vector.extract %161[0, 0, 0] : f32 from vector<1x1x1xf32>
    %163 = arith.subf %162, %147 : f32
    %164 = arith.addf %99, %107 : f32
    %165 = arith.addf %164, %155 : f32
    %166 = arith.addf %165, %163 : f32
    %cst_57 = arith.constant 5.000000e-01 : f32
    %167 = arith.mulf %cst_57, %166 : f32
    %cst_58 = arith.constant 1.250000e-01 : f32
    %168 = arith.mulf %167, %cst_58 : f32
    %c0_59 = arith.constant 0 : index
    %c0_60 = arith.constant 0 : index
    %169 = memref.load %arg8[%c0_59, %c0_60] : memref<1x1xf32, #tpu.memory_space<smem>>
    memref.store %168, %arg8[%c0_59, %c0_60] : memref<1x1xf32, #tpu.memory_space<smem>>
    return
  }
}

</mosaic_0001>

<bundles_post_ra>
// kernel: custom-call.2
= control target key start
LH: loop header
LB: loop body
LE: loop exit
PB: predicated region body
PF: predicated region fallthrough
CT: control target
= control target key end

     0   :  { %s6_s0 = inlined_call_operand.vmem [shape: f32[8,64], index: 0, kind: output, shape index: {}]  }

// kernel: _forward_impl.5
= control target key start
LH: loop header
LB: loop body
LE: loop exit
PB: predicated region body
PF: predicated region fallthrough
CT: control target
= control target key end

     0   :  { %s604_s12 = smov 0   ;;  %s606_s13 = smov 0   ;;  %s678_s0 = inlined_call_operand.vmem [shape: f32[16,16], index: 0, kind: input, shape index: {}]   ;;  %s679_s1 = inlined_call_operand.vmem [shape: f32[16,64], index: 1, kind: input, shape index: {}]   ;;  %s680_s2 = inlined_call_operand.vmem [shape: f32[64,64], index: 2, kind: input, shape index: {}]   ;;  %s681_s3 = inlined_call_operand.vmem [shape: f32[16,64], index: 3, kind: output, shape index: {}]  }
   0x1   :  { %s608_s14 = smov 0  }
   0x2 LB: > { %s25_s15 = sadd.s32 1, %s575_s13  ;;  %p470_p0 = scmp.ge.s32.totalorder %s579_s14, 1  ;;  %s579_s14 = sphi %s608_s14, %s13_s14   ;;  %s575_s13 = sphi %s606_s13, %s683_s13   ;;  %s571_s12 = sphi %s604_s12, %s682_s12  }
   0x3   : > { %p27_p1 = scmp.ge.s32.totalorder %s25_s15, 2  ;;  %p164_p2 = scmp.lt.s32.totalorder %s579_s14, 3 }
   0x5   : > { %s685_s15 = smov (%p27_p1, %s25_s15), 0  ;;  %p165_p3 = pnand %p470_p0, %p164_p2 }
   0x6   : > { %v219_v0 = vld [vmem:[%s679_s1] sm:$0xff] (!%p165_p3)  ;;  %v220_v1 = vld [vmem:[%s679_s1 + $0x8] sm:$0xff] (!%p165_p3)  ;;  %p194_p4 = scmp.lt.s32.totalorder (!%p165_p3), %s571_s12, 1  ;;  %v581_v2 = vmov (!%p165_p3), 0.0|0.0   ;;  %vm582_vm0 = vmmov (!%p165_p3), 0   ;;  %v583_v4 = vmov (!%p165_p3), 0.0  }
   0x7   : > { %168 = sbr.rel (%p165_p3) target bundleno = 455 (0x1c7), region = 32  ;;  %515 = vmatprep.subr.bf16.mxu0 (!%p165_p3), %v581_v2  ;;  %v516_v3 = vpack.c.bf16 (!%p165_p3), %v220_v1, %v219_v0  ;;  %493 = vmatprep.mubr.msk.f32.mxu0 (!%p165_p3), %vm582_vm0, %v583_v4  ;;  %v303_v5 = vld [vmem:[%s680_s2] sm:$0xff] (!%p165_p3)  ;;  %v304_v6 = vld [vmem:[%s680_s2 + $0x8] sm:$0xff] (!%p165_p3)  ;;  %vm215_vm1 = vcmask (!%p165_p3), 523264   ;;  %vm221_vm2 = vcmask (!%p165_p3), 130048   ;;  %v305_v9 = vld [vmem:[%s680_s2 + $0x10] sm:$0xff] (!%p165_p3) }
   0x8   : > { %518 = vmatprep.subr.bf16.mxu1 (!%p165_p3), %v581_v2  ;;  %v519_v7 = vpack.c.bf16 (!%p165_p3), %v304_v6, %v303_v5  ;;  %216 = vst.msk [vmem:[#allocation2] sm:$0xff] (!%p165_p3), %vm215_vm1, %v583_v4  ;;  %512 = vmatprep.mubr.msk.f32.mxu1 (!%p165_p3), %vm582_vm0, %v583_v4  ;;  %v306_v10 = vld [vmem:[%s680_s2 + $0x18] sm:$0xff] (!%p165_p3)  ;;  %v307_v12 = vld [vmem:[%s680_s2 + $0x20] sm:$0xff] (!%p165_p3)  ;;  %v308_v13 = vld [vmem:[%s680_s2 + $0x28] sm:$0xff] (!%p165_p3) }
   0x9   : > { %517 = vmatpush3.bf16.msra.mxu0 (!%p165_p3), %v516_v3  ;;  %v522_v11 = vpack.c.bf16 (!%p165_p3), %v306_v10, %v305_v9  ;;  %v309_v14 = vld [vmem:[%s680_s2 + $0x30] sm:$0xff] (!%p165_p3)  ;;  %v525_v15 = vpack.c.bf16 (!%p165_p3), %v308_v13, %v307_v12  ;;  %v310_v16 = vld [vmem:[%s680_s2 + $0x38] sm:$0xff] (!%p165_p3) }
   0xa   : > { %520 = vmatpush3.bf16.msra.mxu1 (!%p165_p3), %v519_v7  ;;  %v528_v17 = vpack.c.bf16 (!%p165_p3), %v310_v16, %v309_v14 }
   0xb   : > { %521 = vmatprep.subr.bf16.mxu1 (!%p165_p3), %v581_v2 }
   0xe   : > { %s687_s12 = smov (!%p194_p4, %s571_s12), 1  ;;  %523 = vmatpush3.bf16.msra.mxu1 %v522_v11 }
   0xf   : > { %s471_s24 = sshll.u32 %s687_s12, 3  ;;  %524 = vmatprep.subr.bf16.mxu1 %v581_v2  ;;  %v217_v18 = vld [vmem:[#allocation2] sm:$0xff] }
  0x10   : > { %s200_s27 = scalar_lea.vmem %s678_s0, %s471_s24  ;;  %s210_s19 = scalar_lea.vmem %s681_s3, %s471_s24 }
  0x11   : > { %v218_v8 = vld [vmem:[%s200_s27] sm:$0xff] }
  0x12   : > { %494 = vmatmul.mubr.msk.f32.vlgmr.msra.gmra.mrb[0].mxu0 %vm221_vm2, %v218_v8  ;;  %526 = vmatpush3.bf16.msra.mxu1 %v525_v15 }
  0x13   : > { %527 = vmatprep.subr.bf16.mxu1 %v581_v2 }
  0x16   : > { %529 = vmatpush3.bf16.msra.mxu1 %v528_v17 }
  0xe5   : > { %v291_v19 = vpop.f32.mrb[0].mxu0 }
  0xe6   : > { %v295_v20 = vadd.f32 %v291_v19, %v217_v18  ;;  %v495_v21 = vpop.f32.mrb[1].mxu0 }
  0xe8   : > { %297 = vst.msk [vmem:[#allocation2] sm:$0xff] %vm215_vm1, %v295_v20 }
  0xef   : > { %v301_v22 = vld [vmem:[#allocation2] sm:$0xff] }
  0xf0   : > { %v302_v23 = vmax.f32 %v301_v22, 0.0 }
  0xf2   : > { %513 = vmatmul.mubr.msk.f32.vlgmr.msra.gmra.mrb[0].mxu1 %vm215_vm1, %v302_v23 }
 0x1c5   : > { %v380_v24 = vpop.f32.mrb[0].mxu1 }
 0x1c6   : > { %384 = vst.msk [vmem:[%s210_s19] sm:$0xff] %vm215_vm1, %v380_v24  ;;  %v514_v25 = vpop.f32.mrb[1].mxu1 }
 0x1c7 PF: > { %s13_s14 = sadd.s32 1, %s579_s14   ;;  %s682_s12 = smov %s575_s13 }
 0x1c8   : > { %p10_p5 = scmp.ge.s32.totalorder %s13_s14, 4   ;;  %s683_s13 = smov %s685_s15 }
 0x1ca   :  { %12 = sbr.rel (!%p10_p5) target bundleno = 2 (0x2), region = 73 }

// kernel: _forward_impl.4
= control target key start
LH: loop header
LB: loop body
LE: loop exit
PB: predicated region body
PF: predicated region fallthrough
CT: control target
= control target key end

     0   :  { %s525_s15 = smov 0   ;;  %s578_s0 = inlined_call_operand.vmem [shape: f32[16,16], index: 0, kind: input, shape index: {}]   ;;  %s579_s1 = inlined_call_operand.vmem [shape: f32[16,64], index: 1, kind: input, shape index: {}]   ;;  %s580_s2 = inlined_call_operand.vmem [shape: f32[1,64], index: 2, kind: input, shape index: {}]   ;;  %s581_s3 = inlined_call_operand.vmem [shape: f32[64,64], index: 3, kind: input, shape index: {}]   ;;  %s582_s4 = inlined_call_operand.vmem [shape: f32[16,64], index: 4, kind: output, shape index: {}]  }
   0x1 LB: > { %s413_s16 = sadd.s32 4294967295, %s495_s15   ;;  %p417_p0 = scmp.ge.s32.totalorder %s495_s15, 1  ;;  %s495_s15 = sphi %s525_s15, %s14_s15  }
   0x2   : > { %p161_p1 = scmp.lt.s32.totalorder %s495_s15, 3 }
   0x4   : > { %p162_p2 = pnand %p417_p0, %p161_p1 }
   0x5   : > { %v194_v0 = vld [vmem:[%s579_s1] sm:$0xff] (!%p162_p2)  ;;  %v195_v1 = vld [vmem:[%s579_s1 + $0x8] sm:$0xff] (!%p162_p2)  ;;  %p185_p3 = scmp.lt.s32.totalorder (!%p162_p2), %s413_s16, 1  ;;  %v497_v2 = vmov (!%p162_p2), 0.0|0.0   ;;  %vm498_vm0 = vmmov (!%p162_p2), 0   ;;  %v499_v4 = vmov (!%p162_p2), 0.0  }
   0x6   : > { %165 = sbr.rel (%p162_p2) target bundleno = 444 (0x1bc), region = 36  ;;  %463 = vmatprep.subr.bf16.mxu0 (!%p162_p2), %v497_v2  ;;  %v464_v3 = vpack.c.bf16 (!%p162_p2), %v195_v1, %v194_v0  ;;  %441 = vmatprep.mubr.msk.f32.mxu0 (!%p162_p2), %vm498_vm0, %v499_v4  ;;  %v277_v5 = vld [vmem:[%s581_s3] sm:$0xff] (!%p162_p2)  ;;  %v278_v6 = vld [vmem:[%s581_s3 + $0x8] sm:$0xff] (!%p162_p2)  ;;  %v279_v7 = vld [vmem:[%s581_s3 + $0x10] sm:$0xff] (!%p162_p2)  ;;  %vm203_vm1 = vcmask (!%p162_p2), 130048   ;;  %vm285_vm2 = vcmask (!%p162_p2), 523264  }
   0x7   : > { %466 = vmatprep.subr.bf16.mxu1 (!%p162_p2), %v497_v2  ;;  %v467_v8 = vpack.c.bf16 (!%p162_p2), %v278_v6, %v277_v5  ;;  %v280_v9 = vld [vmem:[%s581_s3 + $0x18] sm:$0xff] (!%p162_p2)  ;;  %460 = vmatprep.mubr.msk.f32.mxu1 (!%p162_p2), %vm498_vm0, %v499_v4  ;;  %v281_v11 = vld [vmem:[%s581_s3 + $0x20] sm:$0xff] (!%p162_p2)  ;;  %v282_v12 = vld [vmem:[%s581_s3 + $0x28] sm:$0xff] (!%p162_p2) }
   0x8   : > { %465 = vmatpush3.bf16.msra.mxu0 (!%p162_p2), %v464_v3  ;;  %v470_v10 = vpack.c.bf16 (!%p162_p2), %v280_v9, %v279_v7  ;;  %v473_v14 = vpack.c.bf16 (!%p162_p2), %v282_v12, %v281_v11  ;;  %v283_v15 = vld [vmem:[%s581_s3 + $0x30] sm:$0xff] (!%p162_p2)  ;;  %v284_v16 = vld [vmem:[%s581_s3 + $0x38] sm:$0xff] (!%p162_p2)  ;;  %v420_v18 = vld [vmem:[%s580_s2] ss:$0 sm:$0xff] (!%p162_p2) }
   0x9   : > { %468 = vmatpush3.bf16.msra.mxu1 (!%p162_p2), %v467_v8  ;;  %v476_v17 = vpack.c.bf16 (!%p162_p2), %v284_v16, %v283_v15 }
   0xa   : > { %469 = vmatprep.subr.bf16.mxu1 (!%p162_p2), %v497_v2 }
   0xd   : > { %s584_s16 = smov (!%p185_p3, %s413_s16), 1  ;;  %471 = vmatpush3.bf16.msra.mxu1 %v470_v10 }
   0xe   : > { %s418_s29 = sshll.u32 %s584_s16, 3  ;;  %472 = vmatprep.subr.bf16.mxu1 %v497_v2 }
   0xf   : > { %s188_s6 = scalar_lea.vmem %s578_s0, %s418_s29  ;;  %s192_s20 = scalar_lea.vmem %s582_s4, %s418_s29 }
  0x10   : > { %v193_v13 = vld [vmem:[%s188_s6] sm:$0xff] }
  0x11   : > { %442 = vmatmul.mubr.msk.f32.vlgmr.msra.gmra.mrb[0].mxu0 %vm203_vm1, %v193_v13  ;;  %474 = vmatpush3.bf16.msra.mxu1 %v473_v14 }
  0x12   : > { %475 = vmatprep.subr.bf16.mxu1 %v497_v2 }
  0x15   : > { %477 = vmatpush3.bf16.msra.mxu1 %v476_v17 }
  0xe4   : > { %v273_v19 = vpop.f32.mrb[0].mxu0 }
  0xe5   : > { %v274_v20 = vadd.f32 %v420_v18, %v273_v19  ;;  %v443_v21 = vpop.f32.mrb[1].mxu0 }
  0xe7   : > { %461 = vmatmul.mubr.msk.f32.vlgmr.msra.gmra.mrb[0].mxu1 %vm285_vm2, %v274_v20 }
 0x1ba   : > { %v355_v22 = vpop.f32.mrb[0].mxu1 }
 0x1bb   : > { %359 = vst.msk [vmem:[%s192_s20] sm:$0xff] %vm285_vm2, %v355_v22  ;;  %v462_v23 = vpop.f32.mrb[1].mxu1 }
 0x1bc PF: > { %s14_s15 = sadd.s32 1, %s495_s15  }
 0x1bd   : > { %p11_p4 = scmp.ge.s32.totalorder %s14_s15, 4  }
 0x1bf   :  { %13 = sbr.rel (!%p11_p4) target bundleno = 1 (0x1), region = 66 }

// kernel: _forward_impl.6
= control target key start
LH: loop header
LB: loop body
LE: loop exit
PB: predicated region body
PF: predicated region fallthrough
CT: control target
= control target key end

     0   :  { %s981_s27 = smov 0   ;;  %s983_s28 = smov 0   ;;  %s1104_s0 = inlined_call_operand.vmem [shape: f32[16,16], index: 0, kind: input, shape index: {}]   ;;  %s1105_s1 = inlined_call_operand.vmem [shape: f32[16,64], index: 1, kind: input, shape index: {}]   ;;  %s1106_s2 = inlined_call_operand.vmem [shape: f32[64,64], index: 2, kind: input, shape index: {}]   ;;  %s1107_s3 = inlined_call_operand.vmem [shape: f32[1,64], index: 3, kind: input, shape index: {}, may-alias: {3,5,7}]   ;;  %s1108_s4 = inlined_call_operand.vmem [shape: f32[64,64], index: 4, kind: input, shape index: {}]   ;;  %s1109_s5 = inlined_call_operand.vmem [shape: f32[1,64], index: 5, kind: input, shape index: {}, may-alias: {3,5,7}]   ;;  %s1110_s6 = inlined_call_operand.vmem [shape: f32[1,64], index: 6, kind: input, shape index: {}]   ;;  %s1111_s7 = inlined_call_operand.vmem [shape: f32[1,64], index: 7, kind: input, shape index: {}, may-alias: {3,5,7}]   ;;  %s1112_s8 = inlined_call_operand.vmem [shape: f32[16,128], index: 8, kind: output, shape index: {}]  }
   0x1   :  { %s985_s29 = smov 0  }
   0x2 LB: > { %s30_s30 = sadd.s32 1, %s925_s28  ;;  %p767_p0 = scmp.ge.s32.totalorder %s929_s29, 1  ;;  %s929_s29 = sphi %s985_s29, %s18_s29   ;;  %s925_s28 = sphi %s983_s28, %s1114_s28   ;;  %s921_s27 = sphi %s981_s27, %s1113_s27  }
   0x3   : > { %p32_p1 = scmp.ge.s32.totalorder %s30_s30, 2  ;;  %p289_p2 = scmp.lt.s32.totalorder %s929_s29, 3 }
   0x5   : > { %s1116_s30 = smov (%p32_p1, %s30_s30), 0  ;;  %p290_p3 = pnand %p767_p0, %p289_p2 }
   0x6   : > { %v354_v0 = vld [vmem:[%s1105_s1] sm:$0xff] (!%p290_p3)  ;;  %v355_v1 = vld [vmem:[%s1105_s1 + $0x8] sm:$0xff] (!%p290_p3)  ;;  %p329_p4 = scmp.lt.s32.totalorder (!%p290_p3), %s921_s27, 1  ;;  %v931_v2 = vmov (!%p290_p3), 0.0|0.0   ;;  %vm932_vm0 = vmmov (!%p290_p3), 0   ;;  %v933_v4 = vmov (!%p290_p3), 0.0  }
   0x7   : > { %293 = sbr.rel (%p290_p3) target bundleno = 1356 (0x54c), region = 52  ;;  %845 = vmatprep.subr.bf16.mxu0 (!%p290_p3), %v931_v2  ;;  %v846_v3 = vpack.c.bf16 (!%p290_p3), %v355_v1, %v354_v0  ;;  %804 = vmatprep.mubr.msk.f32.mxu0 (!%p290_p3), %vm932_vm0, %v933_v4  ;;  %v437_v5 = vld [vmem:[%s1106_s2] sm:$0xff] (!%p290_p3)  ;;  %v438_v6 = vld [vmem:[%s1106_s2 + $0x8] sm:$0xff] (!%p290_p3)  ;;  %vm350_vm1 = vcmask (!%p290_p3), 523264   ;;  %vm356_vm2 = vcmask (!%p290_p3), 130048   ;;  %v439_v9 = vld [vmem:[%s1106_s2 + $0x10] sm:$0xff] (!%p290_p3) }
   0x8   : > { %848 = vmatprep.subr.bf16.mxu1 (!%p290_p3), %v931_v2  ;;  %v849_v7 = vpack.c.bf16 (!%p290_p3), %v438_v6, %v437_v5  ;;  %351 = vst.msk [vmem:[#allocation2] sm:$0xff] (!%p290_p3), %vm350_vm1, %v933_v4  ;;  %823 = vmatprep.mubr.msk.f32.mxu1 (!%p290_p3), %vm932_vm0, %v933_v4  ;;  %v440_v10 = vld [vmem:[%s1106_s2 + $0x18] sm:$0xff] (!%p290_p3)  ;;  %v441_v12 = vld [vmem:[%s1106_s2 + $0x20] sm:$0xff] (!%p290_p3)  ;;  %v442_v13 = vld [vmem:[%s1106_s2 + $0x28] sm:$0xff] (!%p290_p3)  ;;  %vm625_vm3 = vcmask (!%p290_p3), 261120   ;;  %s934_s19 = smov (!%p290_p3), 96  }
   0x9   : > { %847 = vmatpush3.bf16.msra.mxu0 (!%p290_p3), %v846_v3  ;;  %v852_v11 = vpack.c.bf16 (!%p290_p3), %v440_v10, %v439_v9  ;;  %v855_v14 = vpack.c.bf16 (!%p290_p3), %v442_v13, %v441_v12  ;;  %v443_v15 = vld [vmem:[%s1106_s2 + $0x30] sm:$0xff] (!%p290_p3)  ;;  %v444_v16 = vld [vmem:[%s1106_s2 + $0x38] sm:$0xff] (!%p290_p3)  ;;  %v446_v23 = vld [vmem:[%s1108_s4] sm:$0xff] (!%p290_p3)  ;;  %s935_s24 = smov (!%p290_p3), 64  }
   0xa   : > { %850 = vmatpush3.bf16.msra.mxu1 (!%p290_p3), %v849_v7  ;;  %860 = vmatprep.subr.bf16.mxu0 (!%p290_p3), %v931_v2  ;;  %v858_v17 = vpack.c.bf16 (!%p290_p3), %v444_v16, %v443_v15  ;;  %v447_v24 = vld [vmem:[%s1108_s4 + $0x8] sm:$0xff] (!%p290_p3)  ;;  %v448_v25 = vld [vmem:[%s1108_s4 + $0x10] sm:$0xff] (!%p290_p3)  ;;  %v449_v27 = vld [vmem:[%s1108_s4 + $0x18] sm:$0xff] (!%p290_p3) }
   0xb   : > { %851 = vmatprep.subr.bf16.mxu1 (!%p290_p3), %v931_v2  ;;  %v861_v26 = vpack.c.bf16 (!%p290_p3), %v447_v24, %v446_v23  ;;  %v864_v28 = vpack.c.bf16 (!%p290_p3), %v449_v27, %v448_v25  ;;  %v450_v29 = vld [vmem:[%s1108_s4 + $0x20] sm:$0xff] (!%p290_p3)  ;;  %v451_v30 = vld [vmem:[%s1108_s4 + $0x28] sm:$0xff] (!%p290_p3)  ;;  %v452_v32 = vld [vmem:[%s1108_s4 + $0x30] sm:$0xff] (!%p290_p3) }
   0xc   : > { %v867_v31 = vpack.c.bf16 (!%p290_p3), %v451_v30, %v450_v29  ;;  %v453_v33 = vld [vmem:[%s1108_s4 + $0x38] sm:$0xff] (!%p290_p3)  ;;  %v771_v35 = vld [vmem:[%s1107_s3] ss:$0 sm:$0xff] (!%p290_p3) }
   0xd   : > { %v870_v34 = vpack.c.bf16 (!%p290_p3), %v453_v33, %v452_v32  ;;  %v773_v48 = vld [vmem:[%s1109_s5] ss:$0 sm:$0xff] (!%p290_p3) }
   0xe   : > { %s1118_s27 = smov (!%p329_p4, %s921_s27), 1  ;;  %853 = vmatpush3.bf16.msra.mxu1 %v852_v11  ;;  %v775_v11 = vld [vmem:[%s1110_s6] ss:$0 sm:$0xff] }
   0xf   : > { %s768_s17 = sshll.u32 %s1118_s27, 3  ;;  %854 = vmatprep.subr.bf16.mxu1 %v931_v2  ;;  %v352_v18 = vld [vmem:[#allocation2] sm:$0xff] }
  0x10   : > { %s335_s20 = scalar_lea.vmem %s1104_s0, %s768_s17  ;;  %s345_s9 = scalar_lea.vmem %s1112_s8, %s768_s17 }
  0x11   : > { %v353_v8 = vld [vmem:[%s335_s20] sm:$0xff] }
  0x12   : > { %805 = vmatmul.mubr.msk.f32.vlgmr.msra.gmra.mrb[0].mxu0 %vm356_vm2, %v353_v8  ;;  %856 = vmatpush3.bf16.msra.mxu1 %v855_v14  ;;  %v776_v14 = vld [vmem:[%s1111_s7] ss:$0 sm:$0xff] }
  0x13   : > { %842 = vmatprep.mubr.msk.f32.mxu0 %vm932_vm0, %v933_v4  ;;  %857 = vmatprep.subr.bf16.mxu1 %v931_v2 }
  0x14   : > { %862 = vmatpush3.bf16.msra.mxu0 %v861_v26 }
  0x15   : > { %863 = vmatprep.subr.bf16.mxu0 %v931_v2 }
  0x16   : > { %859 = vmatpush3.bf16.msra.mxu1 %v858_v17 }
  0x18   : > { %865 = vmatpush3.bf16.msra.mxu0 %v864_v28 }
  0x19   : > { %866 = vmatprep.subr.bf16.mxu0 %v931_v2 }
  0x1c   : > { %868 = vmatpush3.bf16.msra.mxu0 %v867_v31 }
  0x1d   : > { %869 = vmatprep.subr.bf16.mxu0 %v931_v2 }
  0x20   : > { %871 = vmatpush3.bf16.msra.mxu0 %v870_v34 }
  0xe5   : > { %v426_v19 = vpop.f32.mrb[0].mxu0 }
  0xe6   : > { %v430_v20 = vadd.f32 %v426_v19, %v352_v18  ;;  %v806_v21 = vpop.f32.mrb[1].mxu0 }
  0xe8   : > { %432 = vst.msk [vmem:[#allocation2] sm:$0xff] %vm350_vm1, %v430_v20 }
  0xef   : > { %v1042_v22 = vld [vmem:[#allocation2] sm:$0xff] }
  0xf0   : > { %824 = vmatmul.mubr.msk.f32.vlgmr.msra.gmra.mrb[0].mxu1 %vm350_vm1, %v1042_v22 }
 0x1c3   : > { %v532_v36 = vpop.f32.mrb[0].mxu1 }
 0x1c4   : > { %v533_v37 = vadd.f32 %v771_v35, %v532_v36  ;;  %v825_v38 = vpop.f32.mrb[1].mxu1 }
 0x1c6   : > { %v537_v39 = vmul.f32 0.044715, %v533_v37  ;;  %v536_v45 = vmul.f32 0.5, %v533_v37 }
 0x1c8   : > { %v538_v40 = vmul.f32 %v537_v39, %v533_v37 }
 0x1ca   : > { %v539_v41 = vmul.f32 %v538_v40, %v533_v37 }
 0x1cc   : > { %v540_v42 = vadd.f32 %v539_v41, %v533_v37 }
 0x1ce   : > { %v541_v43 = vmul.f32 0.7978846, %v540_v42 }
 0x1d0   : > { %901 = vtanh.f32 %v541_v43 }
 0x1da   : > { %v902_v44 = vpop.eup %901 }
 0x1db   : > { %v543_v46 = vadd.f32 1.0, %v902_v44 }
 0x1dd   : > { %v544_v47 = vmul.f32 %v543_v46, %v536_v45 }
 0x1df   : > { %843 = vmatmul.mubr.msk.f32.vlgmr.msra.gmra.mrb[2].mxu0 %vm350_vm1, %v544_v47 }
 0x2b2   : > { %v620_v49 = vpop.f32.mrb[2].mxu0 }
 0x2b3   : > { %v621_v50 = vadd.f32 %v773_v48, %v620_v49  ;;  %v844_v51 = vpop.f32.mrb[3].mxu0 }
 0x2b5   : > { %v624_v52 = vadd.f32 %v621_v50, %v533_v37 }
 0x2b7   : > { %641 = vrot.lane.b32.xlu0 %v624_v52, %s934_s19  ;;  %v626_v53 = vsel %vm625_vm3, %v624_v52, 0.0 }
 0x2b8   : > { %627 = vadd.xlane.f32.xlu1 %v626_v53 }
 0x329   : > { %v642_v54 = vpop.permute.xlu0 %641 }
 0x32a   : > { %v644_v55 = vsel %vm625_vm3, %v642_v54, 0.0 }
 0x32b   : > { %645 = vadd.xlane.f32.xlu0 %v644_v55 }
 0x345   : > { %v628_v60 = vpop.xlane.xlu1 %627 }
 0x346   : > { %v630_v61 = vmul.f32 0.03125, %v628_v60 }
 0x348   : > { %v631_v62 = vsub.f32 %v624_v52, %v630_v61 }
 0x34a   : > { %v632_v63 = vmul.f32 %v631_v62, %v631_v62 }
 0x34c   : > { %v633_v0 = vsel %vm625_vm3, %v632_v63, 0.0 }
 0x3b8   : > { %v646_v56 = vpop.xlane.xlu0 %645 }
 0x3b9   : > { %v647_v57 = vmul.f32 0.03125, %v646_v56 }
 0x3bb   : > { %v648_v58 = vsub.f32 %v624_v52, %v647_v57 }
 0x3bd   : > { %v649_v59 = vmul.f32 %v648_v58, %v648_v58 }
 0x3bf   : > { %651 = vrot.lane.b32.xlu1 %v649_v59, %s934_s19 }
 0x3e3   : > { %634 = vadd.xlane.f32.xlu1 %v633_v0 }
 0x431   : > { %v652_v1 = vpop.permute.xlu1 %651 }
 0x432   : > { %v654_v2 = vsel %vm625_vm3, %v652_v1, 0.0 }
 0x433   : > { %655 = vadd.xlane.f32.xlu0 %v654_v2 }
 0x470   : > { %v635_v3 = vpop.xlane.xlu1 %634 }
 0x471   : > { %v636_v4 = vmul.f32 0.03125, %v635_v3 }
 0x473   : > { %v637_v5 = vadd.f32 1e-05, %v636_v4 }
 0x475   : > { %903 = vrsqrt.f32 %v637_v5 }
 0x47f   : > { %v904_v9 = vpop.eup %903 }
 0x480   : > { %v639_v12 = vmul.f32 %v904_v9, %v631_v62 }
 0x4c0   : > { %v656_v6 = vpop.xlane.xlu0 %655 }
 0x4c1   : > { %v657_v7 = vmul.f32 0.03125, %v656_v6 }
 0x4c3   : > { %v658_v8 = vadd.f32 1e-05, %v657_v7 }
 0x4c5   : > { %905 = vrsqrt.f32 %v658_v8 }
 0x4cf   : > { %v906_v10 = vpop.eup %905 }
 0x4d0   : > { %v660_v13 = vmul.f32 %v906_v10, %v648_v58 }
 0x4d2   : > { %v661_v15 = vsel %vm625_vm3, %v639_v12, %v660_v13 }
 0x4d3   : > { %v668_v16 = vmul.f32 %v775_v11, %v661_v15 }
 0x4d5   : > { %v675_v17 = vadd.f32 %v776_v14, %v668_v16 }
 0x4d7   : > { %677 = vrot.lane.b32.xlu0 %v675_v17, %s935_s24 }
 0x549   : > { %v678_v18 = vpop.permute.xlu0 %677 }
 0x54a   : > { %v680_v19 = vsel %vm350_vm1, %v1042_v22, %v678_v18 }
 0x54b   : > { %681 = vst [vmem:[%s345_s9] sm:$0xff] %v680_v19 }
 0x54c PF: > { %s18_s29 = sadd.s32 1, %s929_s29   ;;  %s1113_s27 = smov %s925_s28 }
 0x54d   : > { %p15_p5 = scmp.ge.s32.totalorder %s18_s29, 4   ;;  %s1114_s28 = smov %s1116_s30 }
 0x54f   :  { %17 = sbr.rel (!%p15_p5) target bundleno = 2 (0x2), region = 93 }

// kernel: _forward_impl.7
= control target key start
LH: loop header
LB: loop body
LE: loop exit
PB: predicated region body
PF: predicated region fallthrough
CT: control target
= control target key end

     0   :  { %v951_v3 = vmov 0.0|0.0   ;;  %vm952_vm0 = vmmov 0   ;;  %v953_v6 = vmov 0.0   ;;  %s1125_s0 = inlined_call_operand.vmem [shape: f32[8,32], index: 0, kind: input, shape index: {}]   ;;  %s1126_s1 = inlined_call_operand.vmem [shape: f32[32,32], index: 1, kind: input, shape index: {}]   ;;  %s1127_s2 = inlined_call_operand.vmem [shape: f32[1,32], index: 2, kind: input, shape index: {}, may-alias: {2,4,6}]   ;;  %s1128_s3 = inlined_call_operand.vmem [shape: f32[32,32], index: 3, kind: input, shape index: {}]   ;;  %s1129_s4 = inlined_call_operand.vmem [shape: f32[1,32], index: 4, kind: input, shape index: {}, may-alias: {2,4,6}]   ;;  %s1130_s5 = inlined_call_operand.vmem [shape: f32[1,32], index: 5, kind: input, shape index: {}]   ;;  %s1131_s6 = inlined_call_operand.vmem [shape: f32[1,32], index: 6, kind: input, shape index: {}, may-alias: {2,4,6}]   ;;  %s1132_s7 = inlined_call_operand.vmem [shape: f32[8,64], index: 7, kind: input, shape index: {}]   ;;  %s1133_s8 = inlined_call_operand.hbm [shape: f32[1,1], index: 8, kind: output, shape index: {}]  }
   0x1   :  { %v31_v0 = vld [vmem:[%s1126_s1] sm:$0xff]  ;;  %v32_v1 = vld [vmem:[%s1126_s1 + $0x8] sm:$0xff]  ;;  %v33_v2 = vld [vmem:[%s1126_s1 + $0x10] sm:$0xff]  ;;  %882 = vmatprep.subr.bf16.mxu0 %v951_v3  ;;  %843 = vmatprep.mubr.msk.f32.mxu0 %vm952_vm0, %v953_v6 }
   0x2   :  { %v883_v4 = vpack.c.bf16 %v32_v1, %v31_v0  ;;  %v34_v5 = vld [vmem:[%s1126_s1 + $0x18] sm:$0xff]  ;;  %888 = vmatprep.subr.bf16.mxu1 %v951_v3  ;;  %854 = vmatprep.mubr.msk.f32.mxu1 %vm952_vm0, %v953_v6 }
   0x3   :  { %13 = vsyncpa [#allocation3], 0  ;;  %v886_v7 = vpack.c.bf16 %v34_v5, %v33_v2  ;;  %v30_v8 = vld [vmem:[%s1125_s0] sm:$0xff]  ;;  %vm49_vm1 = vcmask 261120   ;;  %v37_v10 = vld [vmem:[%s1128_s3 + $0x8] sm:$0xff]  ;;  %s954_s25 = smov 96  }
   0x4   :  { %884 = vmatpush3.bf16.msra.mxu0 %v883_v4  ;;  %v36_v9 = vld [vmem:[%s1128_s3] sm:$0xff]  ;;  %v38_v11 = vld [vmem:[%s1128_s3 + $0x10] sm:$0xff]  ;;  %v39_v13 = vld [vmem:[%s1128_s3 + $0x18] sm:$0xff]  ;;  %vm460_vm2 = vcmask 64512   ;;  %vm537_vm3 = vcmask 57344   ;;  %vm518_vm4 = vcmask 7168  }
   0x5   :  { %885 = vmatprep.subr.bf16.mxu0 %v951_v3  ;;  %v889_v12 = vpack.c.bf16 %v37_v10, %v36_v9  ;;  %v892_v14 = vpack.c.bf16 %v39_v13, %v38_v11  ;;  %v799_v15 = vld [vmem:[%s1127_s2] ss:$0 sm:$0xff]  ;;  %s939_s0 = scalar_lea.hbm %s1133_s8, 16 }
   0x6   :  { %v801_v28 = vld [vmem:[%s1129_s4] ss:$0 sm:$0xff]  ;;  %p940_p0 = scmp.ne.s32.totalorder %s1133_s8, %s939_s0  ;;  %p943_p1 = scmp.lt.u32.totalorder %s939_s0, %s1133_s8 }
   0x7   :  { %890 = vmatpush3.bf16.msra.mxu1 %v889_v12  ;;  %v240_v34 = vld [vmem:[%s1132_s7] sm:$0xff] }
   0x8   :  { %887 = vmatpush3.bf16.msra.mxu0 %v886_v7  ;;  %891 = vmatprep.subr.bf16.mxu1 %v951_v3  ;;  %v803_v45 = vld [vmem:[%s1130_s5] ss:$0 sm:$0xff]  ;;  %p945_p2 = pnand %p943_p1, %p940_p0 }
   0x9   :  { %857 = vmatprep.subr.mxu0 %v953_v6  ;;  %242 = vrot.lane.b32.xlu1 %v240_v34, %s954_s25  ;;  %v804_v47 = vld [vmem:[%s1131_s6] ss:$0 sm:$0xff] }
   0xb   :  { %844 = vmatmul.mubr.msk.f32.vlgmr.msra.gmra.mrb[0].mxu0 %vm49_vm1, %v30_v8  ;;  %893 = vmatpush3.bf16.msra.mxu1 %v892_v14 }
   0xc   :  { %859 = vmatprep.mubr.msk.f32.mxu0 %vm952_vm0, %v953_v6  ;;  %862 = vmatprep.subr.mxu1 %v953_v6 }
  0x7b   :  { %v243_v40 = vpop.permute.xlu1 %242 }
  0xde   :  { %v119_v16 = vpop.f32.mrb[0].mxu0 }
  0xdf   :  { %v120_v17 = vadd.f32 %v799_v15, %v119_v16  ;;  %v845_v18 = vpop.f32.mrb[1].mxu0 }
  0xe1   :  { %v124_v19 = vmul.f32 0.044715, %v120_v17  ;;  %v123_v25 = vmul.f32 0.5, %v120_v17 }
  0xe3   :  { %v125_v20 = vmul.f32 %v124_v19, %v120_v17 }
  0xe5   :  { %v126_v21 = vmul.f32 %v125_v20, %v120_v17 }
  0xe7   :  { %v127_v22 = vadd.f32 %v126_v21, %v120_v17 }
  0xe9   :  { %v128_v23 = vmul.f32 0.7978846, %v127_v22 }
  0xeb   :  { %911 = vtanh.f32 %v128_v23 }
  0xf5   :  { %v912_v24 = vpop.eup %911 }
  0xf6   :  { %v130_v26 = vadd.f32 1.0, %v912_v24 }
  0xf8   :  { %v131_v27 = vmul.f32 %v130_v26, %v123_v25 }
  0xfa   :  { %855 = vmatmul.mubr.msk.f32.vlgmr.msra.gmra.mrb[0].mxu1 %vm49_vm1, %v131_v27 }
  0xfb   :  { %864 = vmatprep.mubr.msk.f32.mxu1 %vm952_vm0, %v953_v6  ;;  %863 = vmatpush3.xpose.msk.msra.mxu1 %vm49_vm1, %v243_v40 }
  0xfc   :  { %872 = vmatprep.subr.mxu1 %v953_v6 }
  0xfe   :  { %865 = vmatmul.mubr.msk.f32.vlgmr.msra.gmra.mrb[2].mxu1 %vm49_vm1, %v243_v40 }
  0xff   :  { %873 = vmatpush3.xpose.msk.msra.mxu1 %vm49_vm1, %v243_v40  ;;  %874 = vmatprep.mubr.msk.f32.mxu1 %vm952_vm0, %v953_v6 }
 0x102   :  { %875 = vmatmul.mubr.msk.f32.vlgmr.msra.gmra.mrb[4].mxu1 %vm49_vm1, %v240_v34 }
 0x1cd   :  { %v207_v29 = vpop.f32.mrb[0].mxu1 }
 0x1ce   :  { %v208_v30 = vadd.f32 %v801_v28, %v207_v29  ;;  %v856_v31 = vpop.f32.mrb[1].mxu1 }
 0x1d0   :  { %v211_v32 = vadd.f32 %v208_v30, %v120_v17 }
 0x1d1   :  { %v385_v50 = vpop.f32.mrb[2].mxu1 }
 0x1d2   :  { %v212_v33 = vsel %vm49_vm1, %v211_v32, 0.0  ;;  %v866_v51 = vpop.f32.mrb[3].mxu1 }
 0x1d3   :  { %213 = vadd.xlane.f32.xlu0 %v212_v33 }
 0x1d5   :  { %v1076_v52 = vpop.f32.mrb[4].mxu1 }
 0x1d6   :  { %v876_v53 = vpop.f32.mrb[5].mxu1  ;;  %v704_v11 = vsel %vm460_vm2, %v1076_v52, -inf }
 0x260   :  { %v214_v35 = vpop.xlane.xlu0 %213 }
 0x261   :  { %v216_v36 = vmul.f32 0.03125, %v214_v35 }
 0x263   :  { %v217_v37 = vsub.f32 %v211_v32, %v216_v36 }
 0x265   :  { %v218_v38 = vmul.f32 %v217_v37, %v217_v37 }
 0x267   :  { %v219_v39 = vsel %vm49_vm1, %v218_v38, 0.0 }
 0x268   :  { %220 = vadd.xlane.f32.xlu0 %v219_v39 }
 0x2f5   :  { %v221_v41 = vpop.xlane.xlu0 %220 }
 0x2f6   :  { %v222_v42 = vmul.f32 0.03125, %v221_v41 }
 0x2f8   :  { %v223_v43 = vadd.f32 1e-05, %v222_v42 }
 0x2fa   :  { %913 = vrsqrt.f32 %v223_v43  ;;  %v716_v43 = vrot.slane %v704_v11, 4 }
 0x304   :  { %v914_v44 = vpop.eup %913 }
 0x305   :  { %v225_v46 = vmul.f32 %v914_v44, %v217_v37  ;;  %v717_v44 = vmax.f32 %v704_v11, %v716_v43 }
 0x307   :  { %v232_v48 = vmul.f32 %v803_v45, %v225_v46  ;;  %v718_v45 = vrot.slane %v717_v44, 2 }
 0x309   :  { %v239_v49 = vadd.f32 %v804_v47, %v232_v48  ;;  %v719_v46 = vmax.f32 %v717_v44, %v718_v45 }
 0x30b   :  { %858 = vmatpush3.xpose.msk.msra.mxu0 %vm49_vm1, %v239_v49  ;;  %v720_v47 = vrot.slane %v719_v46, 1 }
 0x30c   :  { %867 = vmatprep.subr.mxu0 %v953_v6 }
 0x30d   :  { %v721_v48 = vmax.f32 %v719_v46, %v720_v47 }
 0x30e   :  { %860 = vmatmul.mubr.msk.f32.vlgmr.msra.gmra.mrb[2].mxu0 %vm49_vm1, %v243_v40 }
 0x30f   :  { %868 = vmatpush3.xpose.msk.msra.mxu0 %vm49_vm1, %v239_v49  ;;  %869 = vmatprep.mubr.msk.f32.mxu0 %vm952_vm0, %v953_v6 }
 0x310   :  { %877 = vmatprep.subr.mxu0 %v953_v6 }
 0x312   :  { %870 = vmatmul.mubr.msk.f32.vlgmr.msra.gmra.mrb[4].mxu0 %vm49_vm1, %v239_v49  ;;  %v722_v49 = vsub.f32 %v1076_v52, %v721_v48 }
 0x313   :  { %878 = vmatpush3.xpose.msk.msra.mxu0 %vm49_vm1, %v240_v34  ;;  %879 = vmatprep.mubr.msk.f32.mxu0 %vm952_vm0, %v953_v6 }
 0x316   :  { %880 = vmatmul.mubr.msk.f32.vlgmr.msra.gmra.mrb[6].mxu0 %vm49_vm1, %v240_v34 }
 0x3e1   :  { %v1078_v54 = vpop.f32.mrb[2].mxu0 }
 0x3e2   :  { %v861_v55 = vpop.f32.mrb[3].mxu0  ;;  %v472_v56 = vsel %vm460_vm2, %v1078_v54, -inf }
 0x3e3   :  { %v484_v57 = vrot.slane %v472_v56, 4 }
 0x3e5   :  { %v455_v58 = vpop.f32.mrb[4].mxu0  ;;  %v485_v59 = vmax.f32 %v472_v56, %v484_v57 }
 0x3e6   :  { %v456_v60 = vadd.f32 %v455_v58, %v385_v50  ;;  %v871_v61 = vpop.f32.mrb[5].mxu0 }
 0x3e7   :  { %v486_v62 = vrot.slane %v485_v59, 2 }
 0x3e8   :  { %v459_v63 = vmul.f32 0.5, %v456_v60 }
 0x3e9   :  { %v687_v0 = vpop.f32.mrb[6].mxu0  ;;  %v487_v1 = vmax.f32 %v485_v59, %v486_v62 }
 0x3ea   :  { %v691_v2 = vadd.f32 %v687_v0, %v385_v50  ;;  %v881_v3 = vpop.f32.mrb[7].mxu0  ;;  %v461_v4 = vsel %vm460_vm2, %v459_v63, -inf  ;;  %v723_v50 = vmul.f32 1.442695, %v722_v49 }
 0x3eb   :  { %462 = vmax.xlane.f32.xlu1 %v461_v4  ;;  %v488_v5 = vrot.slane %v487_v1, 1 }
 0x3ec   :  { %v692_v6 = vmul.f32 0.5, %v691_v2 }
 0x3ed   :  { %v489_v7 = vmax.f32 %v487_v1, %v488_v5 }
 0x3ee   :  { %v693_v8 = vsel %vm460_vm2, %v692_v6, -inf }
 0x3ef   :  { %694 = vmax.xlane.f32.xlu0 %v693_v8  ;;  %v490_v9 = vsub.f32 %v1078_v54, %v489_v7 }
 0x3f1   :  { %v491_v10 = vmul.f32 1.442695, %v490_v9 }
 0x3f3   :  { %915 = vpow2.f32 %v491_v10  ;;  %473 = vmax.xlane.f32.xlu0 %v472_v56 }
 0x3f7   :  { %705 = vmax.xlane.f32.xlu0 %v704_v11 }
 0x3fd   :  { %v916_v12 = vpop.eup %915 }
 0x3fe   :  { %v493_v13 = vsel %vm460_vm2, %v916_v12, 0.0 }
 0x3ff   :  { %v494_v14 = vrot.slane %v493_v13, 4 }
 0x401   :  { %v495_v15 = vadd.f32 %v494_v14, %v493_v13 }
 0x403   :  { %v496_v16 = vrot.slane %v495_v15, 2 }
 0x405   :  { %v497_v17 = vadd.f32 %v496_v16, %v495_v15 }
 0x407   :  { %v498_v18 = vrot.slane %v497_v17, 1 }
 0x409   :  { %v499_v19 = vadd.f32 %v498_v18, %v497_v17 }
 0x40b   :  { %917 = vlog2.f32 %v499_v19 }
 0x415   :  { %v918_v20 = vpop.eup %917 }
 0x416   :  { %v501_v21 = vmul.f32 0.6931472, %v918_v20 }
 0x418   :  { %v1088_v22 = vadd.f32 %v501_v21, %v489_v7 }
 0x478   :  { %v463_v23 = vpop.xlane.xlu1 %462 }
 0x479   :  { %v464_v24 = vsub.f32 %v459_v63, %v463_v23 }
 0x47b   :  { %v465_v25 = vmul.f32 1.442695, %v464_v24 }
 0x47c   :  { %v695_v26 = vpop.xlane.xlu0 %694 }
 0x47d   :  { %919 = vpow2.f32 %v465_v25  ;;  %v696_v27 = vsub.f32 %v692_v6, %v695_v26 }
 0x47f   :  { %v697_v28 = vmul.f32 1.442695, %v696_v27 }
 0x480   :  { %v1090_v29 = vpop.xlane.xlu0 %473 }
 0x481   :  { %921 = vpow2.f32 %v697_v28  ;;  %v475_v30 = vsub.f32 %v1078_v54, %v1090_v29 }
 0x483   :  { %v476_v31 = vmul.f32 1.442695, %v475_v30 }
 0x484   :  { %v1094_v32 = vpop.xlane.xlu0 %705 }
 0x485   :  { %923 = vpow2.f32 %v476_v31  ;;  %v707_v33 = vsub.f32 %v1076_v52, %v1094_v32 }
 0x487   :  { %v920_v34 = vpop.eup %919  ;;  %v708_v35 = vmul.f32 1.442695, %v707_v33 }
 0x488   :  { %v467_v36 = vsel %vm460_vm2, %v920_v34, 0.0 }
 0x489   :  { %925 = vpow2.f32 %v708_v35  ;;  %468 = vadd.xlane.f32.xlu0 %v467_v36 }
 0x48a   :  { %927 = vpow2.f32 %v723_v50 }
 0x48b   :  { %v922_v37 = vpop.eup %921 }
 0x48c   :  { %v699_v38 = vsel %vm460_vm2, %v922_v37, 0.0 }
 0x48d   :  { %700 = vadd.xlane.f32.xlu0 %v699_v38 }
 0x48f   :  { %v924_v39 = vpop.eup %923 }
 0x490   :  { %v478_v40 = vsel %vm460_vm2, %v924_v39, 0.0 }
 0x491   :  { %479 = vadd.xlane.f32.xlu0 %v478_v40 }
 0x493   :  { %v926_v41 = vpop.eup %925 }
 0x494   :  { %v710_v42 = vsel %vm460_vm2, %v926_v41, 0.0  ;;  %v928_v51 = vpop.eup %927 }
 0x495   :  { %711 = vadd.xlane.f32.xlu0 %v710_v42  ;;  %v725_v53 = vsel %vm460_vm2, %v928_v51, 0.0 }
 0x496   :  { %v726_v55 = vrot.slane %v725_v53, 4 }
 0x498   :  { %v727_v56 = vadd.f32 %v726_v55, %v725_v53 }
 0x49a   :  { %v728_v57 = vrot.slane %v727_v56, 2 }
 0x49c   :  { %v729_v59 = vadd.f32 %v728_v57, %v727_v56 }
 0x49e   :  { %v730_v61 = vrot.slane %v729_v59, 1 }
 0x4a0   :  { %v731_v62 = vadd.f32 %v730_v61, %v729_v59 }
 0x516   :  { %v469_v58 = vpop.xlane.xlu0 %468 }
 0x517   :  { %929 = vrcp.f32 %v469_v58 }
 0x51a   :  { %v701_v60 = vpop.xlane.xlu0 %700 }
 0x51b   :  { %931 = vrcp.f32 %v701_v60 }
 0x51c   :  { %933 = vlog2.f32 %v731_v62 }
 0x51e   :  { %v480_v27 = vpop.xlane.xlu0 %479 }
 0x51f   :  { %935 = vlog2.f32 %v480_v27 }
 0x521   :  { %v930_v63 = vpop.eup %929 }
 0x522   :  { %v471_v0 = vmul.f32 %v930_v63, %v920_v34  ;;  %v712_v28 = vpop.xlane.xlu0 %711 }
 0x523   :  { %937 = vlog2.f32 %v712_v28 }
 0x524   :  { %v514_v1 = vsel %vm460_vm2, %v471_v0, 0.0  ;;  %v503_v2 = vmul.f32 %v471_v0, %v1078_v54 }
 0x525   :  { %v932_v3 = vpop.eup %931  ;;  %515 = vadd.xlane.f32.xlu0 %v514_v1  ;;  %v530_v4 = vrot.slane %v514_v1, 4 }
 0x526   :  { %v504_v5 = vsel %vm460_vm2, %v503_v2, 0.0  ;;  %v703_v6 = vmul.f32 %v932_v3, %v922_v37  ;;  %v934_v14 = vpop.eup %933 }
 0x527   :  { %v531_v7 = vadd.f32 %v530_v4, %v514_v1  ;;  %505 = vadd.xlane.f32.xlu1 %v504_v5  ;;  %v733_v19 = vmul.f32 0.6931472, %v934_v14 }
 0x528   :  { %v746_v8 = vsel %vm460_vm2, %v703_v6, 0.0  ;;  %v735_v9 = vmul.f32 %v703_v6, %v1076_v52 }
 0x529   :  { %v532_v10 = vrot.slane %v531_v7, 2  ;;  %747 = vadd.xlane.f32.xlu0 %v746_v8  ;;  %v761_v11 = vrot.slane %v746_v8, 4  ;;  %v734_v52 = vadd.f32 %v733_v19, %v721_v48  ;;  %v936_v30 = vpop.eup %935 }
 0x52a   :  { %v736_v54 = vsel %vm460_vm2, %v735_v9, 0.0  ;;  %v482_v31 = vmul.f32 0.6931472, %v936_v30 }
 0x52b   :  { %v533_v12 = vadd.f32 %v532_v10, %v531_v7  ;;  %v762_v13 = vadd.f32 %v761_v11, %v746_v8 }
 0x52c   :  { %v483_v35 = vadd.f32 %v482_v31, %v1090_v29 }
 0x52d   :  { %v763_v15 = vrot.slane %v762_v13, 2  ;;  %737 = vadd.xlane.f32.xlu0 %v736_v54  ;;  %v534_v16 = vrot.slane %v533_v12, 1  ;;  %v938_v33 = vpop.eup %937 }
 0x52e   :  { %v714_v34 = vmul.f32 0.6931472, %v938_v33 }
 0x52f   :  { %v764_v17 = vadd.f32 %v763_v15, %v762_v13  ;;  %v535_v18 = vadd.f32 %v534_v16, %v533_v12 }
 0x530   :  { %v715_v40 = vadd.f32 %v714_v34, %v1094_v32 }
 0x531   :  { %v536_v20 = vmul.f32 %v535_v18, %v1088_v22  ;;  %v765_v21 = vrot.slane %v764_v17, 1 }
 0x533   :  { %v538_v23 = vsel %vm537_vm3, %v536_v20, 0.0  ;;  %v766_v24 = vadd.f32 %v765_v21, %v764_v17 }
 0x534   :  { %539 = vadd.xlane.f32.xlu1 %v538_v23 }
 0x535   :  { %v767_v25 = vmul.f32 %v766_v24, %v734_v52 }
 0x537   :  { %v768_v26 = vsel %vm537_vm3, %v767_v25, 0.0 }
 0x5b2   :  { %v516_v36 = vpop.xlane.xlu0 %515 }
 0x5b3   :  { %v517_v22 = vmul.f32 %v516_v36, %v483_v35 }
 0x5b4   :  { %v506_v37 = vpop.xlane.xlu1 %505 }
 0x5b5   :  { %v507_v38 = vrot.slane %v506_v37, 4  ;;  %v519_v39 = vsel %vm518_vm4, %v517_v22, 0.0 }
 0x5b6   :  { %520 = vadd.xlane.f32.xlu0 %v519_v39  ;;  %v748_v41 = vpop.xlane.xlu0 %747 }
 0x5b7   :  { %v508_v42 = vadd.f32 %v507_v38, %v506_v37  ;;  %v749_v43 = vmul.f32 %v748_v41, %v715_v40 }
 0x5b9   :  { %v509_v44 = vrot.slane %v508_v42, 2  ;;  %v750_v45 = vsel %vm518_vm4, %v749_v43, 0.0 }
 0x5ba   :  { %769 = vadd.xlane.f32.xlu0 %v768_v26  ;;  %751 = vadd.xlane.f32.xlu1 %v750_v45  ;;  %v738_v49 = vpop.xlane.xlu0 %737 }
 0x5bb   :  { %v510_v46 = vadd.f32 %v509_v44, %v508_v42  ;;  %v739_v51 = vrot.slane %v738_v49, 4 }
 0x5bd   :  { %v511_v47 = vrot.slane %v510_v46, 1  ;;  %v740_v55 = vadd.f32 %v739_v51, %v738_v49 }
 0x5bf   :  { %v512_v48 = vadd.f32 %v511_v47, %v510_v46  ;;  %v741_v57 = vrot.slane %v740_v55, 2 }
 0x5c1   :  { %894 = vpush %v512_v48  ;;  %v540_v29 = vpop.xlane.xlu1 %539  ;;  %v742_v2 = vadd.f32 %v741_v57, %v740_v55 }
 0x5c2   :  { %v541_v50 = vrot.slane %v540_v29, 4 }
 0x5c3   :  { %v743_v10 = vrot.slane %v742_v2, 1 }
 0x5c4   :  { %v542_v53 = vadd.f32 %v541_v50, %v540_v29 }
 0x5c5   :  { %v744_v54 = vadd.f32 %v743_v10, %v742_v2 }
 0x5c6   :  { %v543_v56 = vrot.slane %v542_v53, 2 }
 0x5c8   :  { %v544_v62 = vadd.f32 %v543_v56, %v542_v53 }
 0x5ca   :  { %v545_v6 = vrot.slane %v544_v62, 1 }
 0x5cc   :  { %v546_v14 = vadd.f32 %v545_v6, %v544_v62 }
 0x5f2   :  { %s895_s5 = spop %894 }
 0x643   :  { %v521_v32 = vpop.xlane.xlu0 %520 }
 0x644   :  { %v522_v58 = vrot.slane %v521_v32, 4 }
 0x646   :  { %v523_v59 = vadd.f32 %v522_v58, %v521_v32 }
 0x647   :  { %v752_v60 = vpop.xlane.xlu1 %751  ;;  %v770_v61 = vpop.xlane.xlu0 %769 }
 0x648   :  { %v524_v63 = vrot.slane %v523_v59, 2  ;;  %v753_v0 = vrot.slane %v752_v60, 4  ;;  %v771_v1 = vrot.slane %v770_v61, 4 }
 0x64a   :  { %v754_v3 = vadd.f32 %v753_v0, %v752_v60  ;;  %v772_v4 = vadd.f32 %v771_v1, %v770_v61  ;;  %v525_v5 = vadd.f32 %v524_v63, %v523_v59 }
 0x64c   :  { %v755_v7 = vrot.slane %v754_v3, 2  ;;  %v773_v8 = vrot.slane %v772_v4, 2  ;;  %v526_v9 = vrot.slane %v525_v5, 1 }
 0x64e   :  { %v756_v11 = vadd.f32 %v755_v7, %v754_v3  ;;  %v774_v12 = vadd.f32 %v773_v8, %v772_v4  ;;  %v527_v13 = vadd.f32 %v526_v9, %v525_v5 }
 0x650   :  { %896 = vpush %v527_v13  ;;  %v757_v15 = vrot.slane %v756_v11, 1  ;;  %v775_v16 = vrot.slane %v774_v12, 1 }
 0x651   :  { %898 = vpush %v546_v14 }
 0x652   :  { %900 = vpush %v744_v54  ;;  %v758_v17 = vadd.f32 %v757_v15, %v756_v11  ;;  %v776_v18 = vadd.f32 %v775_v16, %v774_v12 }
 0x654   :  { %902 = vpush %v758_v17 }
 0x655   :  { %904 = vpush %v776_v18 }
 0x681   :  { %s897_s6 = spop %896 }
 0x682   :  { %s529_s28 = ssub.f32 %s897_s6, %s895_s5  ;;  %s899_s29 = spop %898 }
 0x683   :  { %s548_s30 = ssub.f32 %s899_s29, %s895_s5  ;;  %s901_s9 = spop %900 }
 0x685   :  { %s779_s10 = sadd.f32 %s548_s30, %s529_s28  ;;  %s903_s11 = spop %902 }
 0x686   :  { %s760_s12 = ssub.f32 %s903_s11, %s901_s9  ;;  %s905_s13 = spop %904 }
 0x687   :  { %s778_s14 = ssub.f32 %s905_s13, %s901_s9 }
 0x688   :  { %s780_s1 = sadd.f32 %s779_s10, %s760_s12 }
 0x68a   :  { %s781_s15 = sadd.f32 %s780_s1, %s778_s14 }
 0x68c   :  { %s782_s16 = smul.f32 0.5, %s781_s15 }
 0x68e   :  { %s783_s17 = smul.f32 0.125, %s782_s16 }
 0x690   :  { %785 = sst [smem:[#allocation2]] %s783_s17 }
 0x691   :  { %948 = shalt.err (!%p945_p2)
}
 0x692   :  { %s955_s2 = smov [#allocation2]  }
 0x693   :  { %793 = dma.smem_to_hbm %s955_s2, 16, %s1133_s8, [#allocation3]  }
 0x694   :  { %949 = dma.done.wait [#allocation3], 16  }
 0x695   :  { %950 = vsyncadd [#allocation3], 4294967280 }
 0x696   :  { %797 = sfence }
 0x697   :  { %798 = vsyncpa [#allocation3], 1 }

</bundles_post_ra>
